<compile_context>
chip_gen: v7x
topology: tpu7x:2x2x1
jax: 0.10.0
libtpu: 0.0.40
codegen_flags: <defaults>
</compile_context>

<pallas_src>
import functools

import jax
import jax.numpy as jnp
from jax.experimental import pallas as pl
from jax.experimental.pallas import tpu as pltpu

LANE = 128
SUBLANE = 8


def _round_up(x, m):
    return ((x + m - 1) // m) * m


def _batch_tiling(B, max_tb=1024):
    """Pick (tb, b_pad, nb): few, large batch tiles.

    - B <= 256: one tile, rounded up to 8 sublanes (minimal padding).
    - B  > 256: an even number of 256-aligned tiles capped at max_tb rows,
      so v6e/v7x MXU passes are full and v7x megacore gets >= 2 grid steps.
    """
    if B <= 256:
        tb = _round_up(max(B, SUBLANE), SUBLANE)
        return tb, tb, 1
    nb = 2
    while _round_up(pl.cdiv(B, nb), 256) > max_tb:
        nb += 2
    tb = _round_up(pl.cdiv(B, nb), 256)
    return tb, nb * tb, nb


def actor_mlp_kernel(x_ref, w1_ref, b1_ref, w2_ref, b2_ref, w3_ref, b3_ref,
                     out_ref, *, act_dim):
    """One batch tile: fused Linear+ReLU, Linear+ReLU, Linear+Tanh.

    x_ref: (tb, obs_dim) bf16.  w*: bf16 (in, out) with w3 lane-padded to a
    multiple of 128; b*: f32 (1, out).  Matmuls run bf16 x bf16 -> f32 on the
    MXU; bias add / ReLU on the VPU, tanh on the EUP, all in f32.
    """
    h = jnp.dot(x_ref[...], w1_ref[...], preferred_element_type=jnp.float32)
    h = jnp.maximum(h + b1_ref[...], 0.0)

    h = jnp.dot(h.astype(jnp.bfloat16), w2_ref[...],
                preferred_element_type=jnp.float32)
    h = jnp.maximum(h + b2_ref[...], 0.0)

    o = jnp.dot(h.astype(jnp.bfloat16), w3_ref[...],
                preferred_element_type=jnp.float32)
    o = jnp.tanh(o + b3_ref[...])

    # Store only the real act_dim columns (prefix of the lane-padded result):
    # output block last dim == full array dim, so this is a legal narrow store
    # and cuts HBM writeback ~32x vs. a padded 128-lane f32 slab.
    out_ref[...] = o[:, :act_dim].astype(out_ref.dtype)


def prepare_params(params):
    """Cast weights to bf16 (w3/b3 lane-padded to a multiple of 128), keep
    biases in f32.  Weights are stored (in_features, out_features)."""
    w1, b1, w2, b2, w3, b3 = params
    act_dim = w3.shape[1]
    out_pad = _round_up(act_dim, LANE)
    w3 = jnp.pad(w3, ((0, 0), (0, out_pad - act_dim)))
    b3 = jnp.pad(b3, ((0, 0), (0, out_pad - act_dim)))
    prepared = (w1.astype(jnp.bfloat16), b1.astype(jnp.float32),
                w2.astype(jnp.bfloat16), b2.astype(jnp.float32),
                w3.astype(jnp.bfloat16), b3.astype(jnp.float32))
    return prepared, act_dim


@functools.partial(jax.jit, static_argnames=("act_dim", "max_tb"))
def actor_forward(obs, prepared_params, act_dim, max_tb=1024):
    """Fused MLP forward. obs: (B, obs_dim) float32 -> (B, act_dim) float32."""
    w1, b1, w2, b2, w3, b3 = prepared_params
    B, obs_dim = obs.shape

    tb, b_pad, nb = _batch_tiling(B, max_tb)

    obs_bf16 = obs.astype(jnp.bfloat16)          # halve layer-1 DMA bytes
    if b_pad != B:
        obs_bf16 = jnp.pad(obs_bf16, ((0, b_pad - B), (0, 0)))

    # Constant block index -> weights/biases DMA'd once, VMEM-resident.
    const_spec = lambda p: pl.BlockSpec(p.shape, lambda i: (0, 0))

    out = pl.pallas_call(
        functools.partial(actor_mlp_kernel, act_dim=act_dim),
        out_shape=jax.ShapeDtypeStruct((b_pad, act_dim), jnp.float32),
        grid=(nb,),
        in_specs=[
            pl.BlockSpec((tb, obs_dim), lambda i: (i, 0)),   # obs tile
            const_spec(w1), const_spec(b1),
            const_spec(w2), const_spec(b2),
            const_spec(w3), const_spec(b3),
        ],
        out_specs=pl.BlockSpec((tb, act_dim), lambda i: (i, 0)),
        compiler_params=pltpu.CompilerParams(
            dimension_semantics=("parallel",)),              # v7x: both TCs
    )(obs_bf16, w1, b1, w2, b2, w3, b3)

    return out if b_pad == B else out[:B]


def init_actor_params(key, obs_dim, act_dim, hidden_sizes=(256, 256)):
    """PyTorch nn.Linear default init: U(-1/sqrt(fan_in), 1/sqrt(fan_in)).
    Weights stored as (in_features, out_features)."""
    dims = [obs_dim, *hidden_sizes, act_dim]
    params = []
    for i in range(len(dims) - 1):
        fan_in, fan_out = dims[i], dims[i + 1]
        key, kw, kb = jax.random.split(key, 3)
        bound = 1.0 / jnp.sqrt(float(fan_in))
        w = jax.random.uniform(kw, (fan_in, fan_out), jnp.float32,
                               minval=-bound, maxval=bound)
        b = jax.random.uniform(kb, (1, fan_out), jnp.float32,
                               minval=-bound, maxval=bound)
        params.extend([w, b])
    return tuple(params)


def actor_reference_f32(obs, params):
    """Pure-f32 reference (matches the PyTorch module exactly)."""
    w1, b1, w2, b2, w3, b3 = params
    h = jnp.maximum(obs @ w1 + b1, 0.0)
    h = jnp.maximum(h @ w2 + b2, 0.0)
    return jnp.tanh(h @ w3 + b3)


def actor_reference_bf16(obs, params):
    """Reference matching the kernel's numerics: bf16 matmul operands,
    f32 accumulation, f32 bias."""
    w1, b1, w2, b2, w3, b3 = params

    def layer(x, w, b):
        return jnp.dot(x.astype(jnp.bfloat16), w.astype(jnp.bfloat16),
                       preferred_element_type=jnp.float32) + b

    h = jnp.maximum(layer(obs, w1, b1), 0.0)
    h = jnp.maximum(layer(h, w2, b2), 0.0)
    return jnp.tanh(layer(h, w3, b3))


if __name__ == "__main__":
    key = jax.random.PRNGKey(0)
    obs_dim, act_dim = 16, 4
    hidden_sizes = (256, 256)

    key, k_params = jax.random.split(key)
    params_f32 = init_actor_params(k_params, obs_dim, act_dim, hidden_sizes)
    prepared, act_dim = prepare_params(params_f32)

    # batch=1024: replay-sized, 2 x 512-row tiles (even grid -> both v7x TCs).
    # batch=200 : single tile, no padding (200 is a multiple of 8).
    # batch=8   : tiny per-step call, single padded tile (still correct; in
    #             practice batch such calls or use plain XLA below ~64 rows).
    for batch in (1024, 200, 8):
        key, k_obs = jax.random.split(key)
        obs = jax.random.normal(k_obs, (batch, obs_dim), jnp.float32)

        out = actor_forward(obs, prepared, act_dim)
        out = jax.block_until_ready(out)
        assert out.shape == (batch, act_dim), out.shape

        ref_bf16 = actor_reference_bf16(obs, params_f32)
        assert jnp.allclose(out, ref_bf16, atol=2e-4, rtol=2e-4), \
            f"batch={batch}: mismatch vs bf16-matched reference"

        ref_f32 = actor_reference_f32(obs, params_f32)
        assert jnp.allclose(out, ref_f32, atol=3e-2, rtol=3e-2), \
            f"batch={batch}: mismatch vs f32 reference"

    print("KERNEL_OK")
</pallas_src>

<mosaic_0001>
module attributes {stable_mosaic.version = 11 : i64} {
  func.func @actor_mlp_kernel(%arg0: i32, %arg1: memref<512x16xbf16, #tpu.memory_space<vmem>>, %arg2: memref<16x256xbf16, #tpu.memory_space<vmem>>, %arg3: memref<1x256xf32, #tpu.memory_space<vmem>>, %arg4: memref<256x256xbf16, #tpu.memory_space<vmem>>, %arg5: memref<1x256xf32, #tpu.memory_space<vmem>>, %arg6: memref<256x128xbf16, #tpu.memory_space<vmem>>, %arg7: memref<1x128xf32, #tpu.memory_space<vmem>>, %arg8: memref<512x4xf32, #tpu.memory_space<vmem>>) attributes {dimension_semantics = [#tpu.dimension_semantics<parallel>], iteration_bounds = array<i64: 2>, scalar_prefetch = 0 : i64, scratch_operands = 0 : i64, tpu.core_type = #tpu.core_type<tc>, window_params = [{transform_indices = @transform_0, window_bounds = array<i64: 512, 16>}, {pipeline_mode = #tpu.pipeline_mode<synchronous>, transform_indices = @transform_1, window_bounds = array<i64: 16, 256>}, {pipeline_mode = #tpu.pipeline_mode<synchronous>, transform_indices = @transform_2, window_bounds = array<i64: 1, 256>}, {pipeline_mode = #tpu.pipeline_mode<synchronous>, transform_indices = @transform_3, window_bounds = array<i64: 256, 256>}, {pipeline_mode = #tpu.pipeline_mode<synchronous>, transform_indices = @transform_4, window_bounds = array<i64: 1, 256>}, {pipeline_mode = #tpu.pipeline_mode<synchronous>, transform_indices = @transform_5, window_bounds = array<i64: 256, 128>}, {pipeline_mode = #tpu.pipeline_mode<synchronous>, transform_indices = @transform_6, window_bounds = array<i64: 1, 128>}, {transform_indices = @transform_7, window_bounds = array<i64: 512, 4>}]} {
    %c0 = arith.constant 0 : index
    %c0_0 = arith.constant 0 : index
    %0 = vector.load %arg1[%c0, %c0_0] : memref<512x16xbf16, #tpu.memory_space<vmem>>, vector<512x16xbf16>
    %c0_1 = arith.constant 0 : index
    %c0_2 = arith.constant 0 : index
    %1 = vector.load %arg2[%c0_1, %c0_2] : memref<16x256xbf16, #tpu.memory_space<vmem>>, vector<16x256xbf16>
    %cst = arith.constant dense<0.000000e+00> : vector<512x256xf32>
    %2 = tpu.matmul %0, %1, %cst {dimension_numbers = #tpu.dot_dimension_numbers<[1], [0], [0], [1], [0, 0, 1, 1], [], []>} : vector<512x16xbf16>, vector<16x256xbf16>, vector<512x256xf32> -> vector<512x256xf32>
    %c0_3 = arith.constant 0 : index
    %c0_4 = arith.constant 0 : index
    %3 = vector.load %arg3[%c0_3, %c0_4] : memref<1x256xf32, #tpu.memory_space<vmem>>, vector<1x256xf32>
    %4 = vector.broadcast %3 : vector<1x256xf32> to vector<512x256xf32>
    %5 = arith.addf %2, %4 : vector<512x256xf32>
    %cst_5 = arith.constant 0.000000e+00 : f32
    %6 = vector.broadcast %cst_5 : f32 to vector<512x256xf32>
    %7 = arith.maximumf %5, %6 : vector<512x256xf32>
    %8 = arith.truncf %7 : vector<512x256xf32> to vector<512x256xbf16>
    %c0_6 = arith.constant 0 : index
    %c0_7 = arith.constant 0 : index
    %9 = vector.load %arg4[%c0_6, %c0_7] : memref<256x256xbf16, #tpu.memory_space<vmem>>, vector<256x256xbf16>
    %cst_8 = arith.constant dense<0.000000e+00> : vector<512x256xf32>
    %10 = tpu.matmul %8, %9, %cst_8 {dimension_numbers = #tpu.dot_dimension_numbers<[1], [0], [0], [1], [0, 0, 1, 1], [], []>} : vector<512x256xbf16>, vector<256x256xbf16>, vector<512x256xf32> -> vector<512x256xf32>
    %c0_9 = arith.constant 0 : index
    %c0_10 = arith.constant 0 : index
    %11 = vector.load %arg5[%c0_9, %c0_10] : memref<1x256xf32, #tpu.memory_space<vmem>>, vector<1x256xf32>
    %12 = vector.broadcast %11 : vector<1x256xf32> to vector<512x256xf32>
    %13 = arith.addf %10, %12 : vector<512x256xf32>
    %cst_11 = arith.constant 0.000000e+00 : f32
    %14 = vector.broadcast %cst_11 : f32 to vector<512x256xf32>
    %15 = arith.maximumf %13, %14 : vector<512x256xf32>
    %16 = arith.truncf %15 : vector<512x256xf32> to vector<512x256xbf16>
    %c0_12 = arith.constant 0 : index
    %c0_13 = arith.constant 0 : index
    %17 = vector.load %arg6[%c0_12, %c0_13] : memref<256x128xbf16, #tpu.memory_space<vmem>>, vector<256x128xbf16>
    %cst_14 = arith.constant dense<0.000000e+00> : vector<512x128xf32>
    %18 = tpu.matmul %16, %17, %cst_14 {dimension_numbers = #tpu.dot_dimension_numbers<[1], [0], [0], [1], [0, 0, 1, 1], [], []>} : vector<512x256xbf16>, vector<256x128xbf16>, vector<512x128xf32> -> vector<512x128xf32>
    %c0_15 = arith.constant 0 : index
    %c0_16 = arith.constant 0 : index
    %19 = vector.load %arg7[%c0_15, %c0_16] : memref<1x128xf32, #tpu.memory_space<vmem>>, vector<1x128xf32>
    %20 = vector.broadcast %19 : vector<1x128xf32> to vector<512x128xf32>
    %21 = arith.addf %18, %20 : vector<512x128xf32>
    %22 = math.tanh %21 : vector<512x128xf32>
    %23 = vector.extract_strided_slice %22 {offsets = [0, 0], sizes = [512, 4], strides = [1, 1]} : vector<512x128xf32> to vector<512x4xf32>
    %c0_17 = arith.constant 0 : index
    %c0_18 = arith.constant 0 : index
    %24 = vector.load %arg8[%c0_17, %c0_18] : memref<512x4xf32, #tpu.memory_space<vmem>>, vector<512x4xf32>
    tpu.vector_store %arg8[%c0_17, %c0_18], %23 {strides = array<i32>} : memref<512x4xf32, #tpu.memory_space<vmem>>, vector<512x4xf32>,
    return
  }
  func.func @transform_0(%arg0: i32) -> (i32, i32) {
    %c0_i32 = arith.constant 0 : i32
    %c0_i32_0 = arith.constant 0 : i32
    return %arg0, %c0_i32 : i32, i32
  }
  func.func @transform_1(%arg0: i32) -> (i32, i32) {
    %c0_i32 = arith.constant 0 : i32
    %c0_i32_0 = arith.constant 0 : i32
    %c0_i32_1 = arith.constant 0 : i32
    return %c0_i32, %c0_i32_0 : i32, i32
  }
  func.func @transform_2(%arg0: i32) -> (i32, i32) {
    %c0_i32 = arith.constant 0 : i32
    %c0_i32_0 = arith.constant 0 : i32
    %c0_i32_1 = arith.constant 0 : i32
    return %c0_i32, %c0_i32_0 : i32, i32
  }
  func.func @transform_3(%arg0: i32) -> (i32, i32) {
    %c0_i32 = arith.constant 0 : i32
    %c0_i32_0 = arith.constant 0 : i32
    %c0_i32_1 = arith.constant 0 : i32
    return %c0_i32, %c0_i32_0 : i32, i32
  }
  func.func @transform_4(%arg0: i32) -> (i32, i32) {
    %c0_i32 = arith.constant 0 : i32
    %c0_i32_0 = arith.constant 0 : i32
    %c0_i32_1 = arith.constant 0 : i32
    return %c0_i32, %c0_i32_0 : i32, i32
  }
  func.func @transform_5(%arg0: i32) -> (i32, i32) {
    %c0_i32 = arith.constant 0 : i32
    %c0_i32_0 = arith.constant 0 : i32
    %c0_i32_1 = arith.constant 0 : i32
    return %c0_i32, %c0_i32_0 : i32, i32
  }
  func.func @transform_6(%arg0: i32) -> (i32, i32) {
    %c0_i32 = arith.constant 0 : i32
    %c0_i32_0 = arith.constant 0 : i32
    %c0_i32_1 = arith.constant 0 : i32
    return %c0_i32, %c0_i32_0 : i32, i32
  }
  func.func @transform_7(%arg0: i32) -> (i32, i32) {
    %c0_i32 = arith.constant 0 : i32
    %c0_i32_0 = arith.constant 0 : i32
    return %arg0, %c0_i32 : i32, i32
  }
}

</mosaic_0001>

<bundles_post_ra>
// kernel: actor_forward.1
= control target key start
LH: loop header
LB: loop body
LE: loop exit
PB: predicated region body
PF: predicated region fallthrough
CT: control target
= control target key end

     0   :  { %s2944_s24 = smov 0   ;;  %s3806_s0 = inlined_call_operand.vmem [shape: bf16[1024,16], index: 0, kind: input, shape index: {}]   ;;  %s3807_s1 = inlined_call_operand.vmem [shape: bf16[16,256], index: 1, kind: input, shape index: {}]   ;;  %s3808_s2 = inlined_call_operand.vmem [shape: f32[1,256], index: 2, kind: input, shape index: {}]   ;;  %s3809_s3 = inlined_call_operand.vmem [shape: bf16[256,256], index: 3, kind: input, shape index: {}]   ;;  %s3810_s4 = inlined_call_operand.vmem [shape: f32[1,256], index: 4, kind: input, shape index: {}]   ;;  %s3811_s5 = inlined_call_operand.vmem [shape: bf16[256,128], index: 5, kind: input, shape index: {}]   ;;  %s3812_s6 = inlined_call_operand.vmem [shape: f32[1,128], index: 6, kind: input, shape index: {}]   ;;  %s3813_s7 = inlined_call_operand.vmem [shape: f32[1024,4], index: 7, kind: output, shape index: {}]  }
   0x1 LB: > { %s2531_s25 = sadd.s32 4294967295, %s2901_s24   ;;  %p2535_p0 = scmp.ge.s32.totalorder %s2901_s24, 1  ;;  %s2901_s24 = sphi %s2944_s24, %s17_s24  }
   0x2   : > { %p238_p1 = scmp.lt.s32.totalorder %s2901_s24, 3 }
   0x4   : > { %p239_p2 = pnand %p2535_p0, %p238_p1 }
   0x5   : > { %v2668_v0 = vld [vmem:[%s3807_s1 + $0x4] ss:$8 sps:$4 sm:$0xff] (!%p239_p2)   ;;  %s2536_s28 = sshll.u32 (!%p239_p2), %s2531_s25, 6  ;;  %v2670_v1 = vld [vmem:[%s3807_s1] ss:$8 sps:$4 sm:$0xff] (!%p239_p2)   ;;  %v2903_v2 = vmov (!%p239_p2), 0  }
   0x6   : > { %242 = sbr.rel (%p239_p2) target bundleno = 937 (0x3a9), region = 48  ;;  %660 = vmatprep.mubr.bf16.mxu0 (!%p239_p2), %v2903_v2  ;;  %p271_p3 = scmp.lt.s32.totalorder (!%p239_p2), %s2536_s28, 127  ;;  %820 = vmatprep.mubr.bf16.mxu1 (!%p239_p2), %v2903_v2  ;;  %v2686_v3 = vld [vmem:[%s3809_s3 + $0x4] ss:$8 sps:$4 sm:$0xff] (!%p239_p2)   ;;  %vm531_vm0 = vcmask (!%p239_p2), 130048   ;;  %vm2410_vm1 = vcmask (!%p239_p2), 31744  }
   0x7   : > { %628 = vmatprep.subr.bf16.mxu0 (!%p239_p2), %v2668_v0  ;;  %2657 = vmatprep.subr.bf16.mxu1 (!%p239_p2), %v2668_v0  ;;  %v2684_v6 = vld [vmem:[%s3809_s3] ss:$8 sps:$4 sm:$0xff] (!%p239_p2)   ;;  %v2691_v7 = vld [vmem:[%s3809_s3 + $0x14] ss:$8 sps:$4 sm:$0xff] (!%p239_p2)   ;;  %v2689_v10 = vld [vmem:[%s3809_s3 + $0x10] ss:$8 sps:$4 sm:$0xff] (!%p239_p2)  }
   0x8   : > { %629 = vmatpush1.bf16.msra.mxu0 (!%p239_p2), %v2670_v1  ;;  %2658 = vmatpush1.bf16.msra.mxu1 (!%p239_p2), %v2670_v1  ;;  %v2696_v11 = vld [vmem:[%s3809_s3 + $0x24] ss:$8 sps:$4 sm:$0xff] (!%p239_p2)   ;;  %v2694_v13 = vld [vmem:[%s3809_s3 + $0x20] ss:$8 sps:$4 sm:$0xff] (!%p239_p2)   ;;  %v2701_v14 = vld [vmem:[%s3809_s3 + $0x34] ss:$8 sps:$4 sm:$0xff] (!%p239_p2)  }
   0x9   : > { %1377 = vmatprep.subr.bf16.mxu1 (!%p239_p2), %v2686_v3  ;;  %2057 = vmatprep.subr.bf16.mxu0 (!%p239_p2), %v2903_v2  ;;  %v2699_v16 = vld [vmem:[%s3809_s3 + $0x30] ss:$8 sps:$4 sm:$0xff] (!%p239_p2)   ;;  %v2706_v17 = vld [vmem:[%s3809_s3 + $0x44] ss:$8 sps:$4 sm:$0xff] (!%p239_p2)   ;;  %v2704_v19 = vld [vmem:[%s3809_s3 + $0x40] ss:$8 sps:$4 sm:$0xff] (!%p239_p2)  }
   0xa   : > { %v2710_v20 = vld [vmem:[%s3809_s3 + $0x54] ss:$8 sps:$4 sm:$0xff] (!%p239_p2)   ;;  %v2708_v22 = vld [vmem:[%s3809_s3 + $0x50] ss:$8 sps:$4 sm:$0xff] (!%p239_p2)   ;;  %v2714_v23 = vld [vmem:[%s3809_s3 + $0x64] ss:$8 sps:$4 sm:$0xff] (!%p239_p2)  }
   0xb   : > { %v2712_v25 = vld [vmem:[%s3809_s3 + $0x60] ss:$8 sps:$4 sm:$0xff] (!%p239_p2)   ;;  %v2718_v26 = vld [vmem:[%s3809_s3 + $0x74] ss:$8 sps:$4 sm:$0xff] (!%p239_p2)   ;;  %v2716_v28 = vld [vmem:[%s3809_s3 + $0x70] ss:$8 sps:$4 sm:$0xff] (!%p239_p2)  }
   0xc   : > { %v2722_v29 = vld [vmem:[%s3809_s3 + $0x84] ss:$8 sps:$4 sm:$0xff] (!%p239_p2)   ;;  %v2720_v31 = vld [vmem:[%s3809_s3 + $0x80] ss:$8 sps:$4 sm:$0xff] (!%p239_p2)   ;;  %v2726_v32 = vld [vmem:[%s3809_s3 + $0x94] ss:$8 sps:$4 sm:$0xff] (!%p239_p2)  }
   0xd   : > { %s3815_s28 = smov (!%p271_p3, %s2536_s28), 127  ;;  %v2724_v34 = vld [vmem:[%s3809_s3 + $0x90] ss:$8 sps:$4 sm:$0xff]   ;;  %v2730_v35 = vld [vmem:[%s3809_s3 + $0xa4] ss:$8 sps:$4 sm:$0xff]  }
   0xe   : > { %s2537_s10 = sshll.u32 %s3815_s28, 2  ;;  %v2728_v37 = vld [vmem:[%s3809_s3 + $0xa0] ss:$8 sps:$4 sm:$0xff]   ;;  %v2734_v38 = vld [vmem:[%s3809_s3 + $0xb4] ss:$8 sps:$4 sm:$0xff]   ;;  %s2539_s11 = sshll.u32 %s3815_s28, 3 }
   0xf   : > { %s2970_s13 = scalar_lea.vmem %s3806_s0, %s2537_s10  ;;  %v2732_v40 = vld [vmem:[%s3809_s3 + $0xb0] ss:$8 sps:$4 sm:$0xff]   ;;  %v2738_v41 = vld [vmem:[%s3809_s3 + $0xc4] ss:$8 sps:$4 sm:$0xff]   ;;  %v2736_v43 = vld [vmem:[%s3809_s3 + $0xc0] ss:$8 sps:$4 sm:$0xff]   ;;  %s3600_s15 = scalar_lea.vmem %s3813_s7, %s2539_s11 }
  0x10   : > { %v2671_v4 = vld [vmem:[%s2970_s13] sm:$0xff]   ;;  %v2672_v5 = vld [vmem:[%s2970_s13 + $0x8] sm:$0xff]   ;;  %v2673_v9 = vld [vmem:[%s2970_s13 + $0x10] sm:$0xff]  }
  0x11   : > { %2574 = vmatmul.mubr.msk.bf16.vlgmr.msra.gmra.mrb[0].mxu0 %vm531_vm0, %v2671_v4  ;;  %v2683_v8 = vld [vmem:[%s2970_s13 + $0x80] sm:$0xff]   ;;  %v2688_v12 = vld [vmem:[%s2970_s13 + $0x88] sm:$0xff]   ;;  %v2674_v15 = vld [vmem:[%s2970_s13 + $0x18] sm:$0xff]  }
  0x12   : > { %670 = vmatprep.mubr.bf16.mxu0 %v2903_v2  ;;  %2590 = vmatmul.mubr.msk.bf16.vlgmr.msra.gmra.mrb[0].mxu1 %vm531_vm0, %v2683_v8  ;;  %v2693_v18 = vld [vmem:[%s2970_s13 + $0x90] sm:$0xff]   ;;  %v2675_v21 = vld [vmem:[%s2970_s13 + $0x20] sm:$0xff]   ;;  %v2698_v24 = vld [vmem:[%s2970_s13 + $0x98] sm:$0xff]  }
  0x13   : > { %1378 = vmatpush1.bf16.msra.mxu1 %v2684_v6  ;;  %830 = vmatprep.mubr.bf16.mxu1 %v2903_v2  ;;  %v2676_v27 = vld [vmem:[%s2970_s13 + $0x28] sm:$0xff]   ;;  %v2703_v30 = vld [vmem:[%s2970_s13 + $0xa0] sm:$0xff]   ;;  %v2677_v33 = vld [vmem:[%s2970_s13 + $0x30] sm:$0xff]  }
  0x14   : > { %1379 = vmatprep.subr.bf16.mxu1 %v2691_v7  ;;  %v2707_v36 = vld [vmem:[%s2970_s13 + $0xa8] sm:$0xff]   ;;  %v2678_v39 = vld [vmem:[%s2970_s13 + $0x38] sm:$0xff]   ;;  %v2711_v42 = vld [vmem:[%s2970_s13 + $0xb0] sm:$0xff]  }
  0x15   : > { %v2742_v44 = vld [vmem:[%s3809_s3 + $0xd4] ss:$8 sps:$4 sm:$0xff]   ;;  %v2679_v45 = vld [vmem:[%s2970_s13 + $0x40] sm:$0xff]   ;;  %v2740_v46 = vld [vmem:[%s3809_s3 + $0xd0] ss:$8 sps:$4 sm:$0xff]  }
  0x16   : > { %v2746_v47 = vld [vmem:[%s3809_s3 + $0xe4] ss:$8 sps:$4 sm:$0xff]   ;;  %v2715_v48 = vld [vmem:[%s2970_s13 + $0xb8] sm:$0xff]   ;;  %v2744_v49 = vld [vmem:[%s3809_s3 + $0xe0] ss:$8 sps:$4 sm:$0xff]  }
  0x17   : > { %1380 = vmatpush1.bf16.msra.mxu1 %v2689_v10  ;;  %v2680_v50 = vld [vmem:[%s2970_s13 + $0x48] sm:$0xff]   ;;  %v2719_v51 = vld [vmem:[%s2970_s13 + $0xc0] sm:$0xff]   ;;  %v2681_v52 = vld [vmem:[%s2970_s13 + $0x50] sm:$0xff]  }
  0x18   : > { %1381 = vmatprep.subr.bf16.mxu1 %v2696_v11  ;;  %v2723_v53 = vld [vmem:[%s2970_s13 + $0xc8] sm:$0xff]   ;;  %v2682_v54 = vld [vmem:[%s2970_s13 + $0x58] sm:$0xff]   ;;  %v2727_v55 = vld [vmem:[%s2970_s13 + $0xd0] sm:$0xff]  }
  0x19   : > { %2575 = vmatmul.mubr.msk.bf16.gmra.mrb[4].mxu0 %vm531_vm0, %v2672_v5  ;;  %v2750_v56 = vld [vmem:[%s3809_s3 + $0xf4] ss:$8 sps:$4 sm:$0xff]   ;;  %v2748_v57 = vld [vmem:[%s3809_s3 + $0xf0] ss:$8 sps:$4 sm:$0xff]   ;;  %v2687_v58 = vld [vmem:[%s2970_s13 + $0x60] sm:$0xff]   ;;  %v351_v5 = vlaneseq }
  0x1a   : > { %680 = vmatprep.mubr.bf16.mxu0 %v2903_v2  ;;  %2591 = vmatmul.mubr.msk.bf16.gmra.mrb[4].mxu1 %vm531_vm0, %v2688_v12  ;;  %v2731_v59 = vld [vmem:[%s2970_s13 + $0xd8] sm:$0xff]   ;;  %v2692_v60 = vld [vmem:[%s2970_s13 + $0x68] sm:$0xff]   ;;  %v2735_v61 = vld [vmem:[%s2970_s13 + $0xe0] sm:$0xff]  }
  0x1b   : > { %840 = vmatprep.mubr.bf16.mxu1 %v2903_v2  ;;  %1382 = vmatpush1.bf16.msra.mxu1 %v2694_v13  ;;  %v2697_v62 = vld [vmem:[%s2970_s13 + $0x70] sm:$0xff]   ;;  %v2739_v63 = vld [vmem:[%s2970_s13 + $0xe8] sm:$0xff]   ;;  %v2702_v0 = vld [vmem:[%s2970_s13 + $0x78] sm:$0xff]   ;;  %v3166_v7 = vshrl.u32 %v351_v5, 7 }
  0x1c   : > { %1383 = vmatprep.subr.bf16.mxu1 %v2701_v14  ;;  %v2743_v1 = vld [vmem:[%s2970_s13 + $0xf0] sm:$0xff]   ;;  %v2747_v3 = vld [vmem:[%s2970_s13 + $0xf8] sm:$0xff]   ;;  %v2751_v4 = vld [vmem:[%s3811_s5] sm:$0xff]  }
  0x1d   : > { %2058 = vmatpush1.bf16.msra.mxu0 %v2751_v4  ;;  %v2752_v6 = vld [vmem:[%s3811_s5 + $0x8] sm:$0xff]   ;;  %v353_v8 = vsub.s32 0, %v3166_v7  ;;  %v357_v10 = vsub.s32 1, %v3166_v7  ;;  %v2753_v11 = vld [vmem:[%s3811_s5 + $0x10] sm:$0xff]  }
  0x1e   : > { %2059 = vmatprep.subr.bf16.mxu0 %v2903_v2  ;;  %v2757_v5 = vld [vmem:[%s3811_s5 + $0x30] sm:$0xff]  }
  0x1f   : > { %1384 = vmatpush1.bf16.msra.mxu1 %v2699_v16 }
  0x20   : > { %1385 = vmatprep.subr.bf16.mxu1 %v2706_v17 }
  0x21   : > { %2576 = vmatmul.mubr.msk.bf16.gmra.mrb[8].mxu0 %vm531_vm0, %v2673_v9  ;;  %v349_v9 = vld [vmem:[%s3808_s2] sm:$0x3] }
  0x22   : > { %690 = vmatprep.mubr.bf16.mxu0 %v2903_v2  ;;  %2592 = vmatmul.mubr.msk.bf16.gmra.mrb[8].mxu1 %vm531_vm0, %v2693_v18  ;;  %v3179_v12 = vrot.slane %v349_v9, %v353_v8  ;;  %v3183_v13 = vrot.slane %v349_v9, %v357_v10 }
  0x23   : > { %850 = vmatprep.mubr.bf16.mxu1 %v2903_v2  ;;  %1386 = vmatpush1.bf16.msra.mxu1 %v2704_v19 }
  0x24   : > { %1387 = vmatprep.subr.bf16.mxu1 %v2710_v20  ;;  %2060 = vmatpush1.bf16.msra.mxu0 %v2752_v6 }
  0x25   : > { %2061 = vmatprep.subr.bf16.mxu0 %v2903_v2 }
  0x27   : > { %1388 = vmatpush1.bf16.msra.mxu1 %v2708_v22 }
  0x28   : > { %1389 = vmatprep.subr.bf16.mxu1 %v2714_v23  ;;  %2062 = vmatpush1.bf16.msra.mxu0 %v2753_v11  ;;  %v2755_v23 = vld [vmem:[%s3811_s5 + $0x20] sm:$0xff]  }
  0x29   : > { %2577 = vmatmul.mubr.msk.bf16.gmra.mrb[12].mxu0 %vm531_vm0, %v2674_v15  ;;  %2063 = vmatprep.subr.bf16.mxu0 %v2903_v2  ;;  %v2754_v15 = vld [vmem:[%s3811_s5 + $0x18] sm:$0xff]  }
  0x2a   : > { %700 = vmatprep.mubr.bf16.mxu0 %v2903_v2  ;;  %2593 = vmatmul.mubr.msk.bf16.gmra.mrb[12].mxu1 %vm531_vm0, %v2698_v24 }
  0x2b   : > { %860 = vmatprep.mubr.bf16.mxu1 %v2903_v2  ;;  %1390 = vmatpush1.bf16.msra.mxu1 %v2712_v25 }
  0x2c   : > { %1391 = vmatprep.subr.bf16.mxu1 %v2718_v26  ;;  %2064 = vmatpush1.bf16.msra.mxu0 %v2754_v15 }
  0x2d   : > { %2065 = vmatprep.subr.bf16.mxu0 %v2903_v2 }
  0x2f   : > { %1392 = vmatpush1.bf16.msra.mxu1 %v2716_v28 }
  0x30   : > { %1393 = vmatprep.subr.bf16.mxu1 %v2722_v29  ;;  %2066 = vmatpush1.bf16.msra.mxu0 %v2755_v23 }
  0x31   : > { %2578 = vmatmul.mubr.msk.bf16.gmra.mrb[16].mxu0 %vm531_vm0, %v2675_v21  ;;  %2067 = vmatprep.subr.bf16.mxu0 %v2903_v2 }
  0x32   : > { %710 = vmatprep.mubr.bf16.mxu0 %v2903_v2  ;;  %2594 = vmatmul.mubr.msk.bf16.gmra.mrb[16].mxu1 %vm531_vm0, %v2703_v30 }
  0x33   : > { %870 = vmatprep.mubr.bf16.mxu1 %v2903_v2  ;;  %1394 = vmatpush1.bf16.msra.mxu1 %v2720_v31 }
  0x34   : > { %1395 = vmatprep.subr.bf16.mxu1 %v2726_v32 }
  0x37   : > { %1396 = vmatpush1.bf16.msra.mxu1 %v2724_v34 }
  0x38   : > { %1397 = vmatprep.subr.bf16.mxu1 %v2730_v35 }
  0x39   : > { %2579 = vmatmul.mubr.msk.bf16.gmra.mrb[20].mxu0 %vm531_vm0, %v2676_v27 }
  0x3a   : > { %720 = vmatprep.mubr.bf16.mxu0 %v2903_v2  ;;  %2595 = vmatmul.mubr.msk.bf16.gmra.mrb[20].mxu1 %vm531_vm0, %v2707_v36 }
  0x3b   : > { %880 = vmatprep.mubr.bf16.mxu1 %v2903_v2  ;;  %1398 = vmatpush1.bf16.msra.mxu1 %v2728_v37 }
  0x3c   : > { %1399 = vmatprep.subr.bf16.mxu1 %v2734_v38 }
  0x3f   : > { %1400 = vmatpush1.bf16.msra.mxu1 %v2732_v40 }
  0x40   : > { %1401 = vmatprep.subr.bf16.mxu1 %v2738_v41 }
  0x41   : > { %2580 = vmatmul.mubr.msk.bf16.gmra.mrb[24].mxu0 %vm531_vm0, %v2677_v33 }
  0x42   : > { %730 = vmatprep.mubr.bf16.mxu0 %v2903_v2  ;;  %2596 = vmatmul.mubr.msk.bf16.gmra.mrb[24].mxu1 %vm531_vm0, %v2711_v42 }
  0x43   : > { %890 = vmatprep.mubr.bf16.mxu1 %v2903_v2  ;;  %1402 = vmatpush1.bf16.msra.mxu1 %v2736_v43 }
  0x44   : > { %1403 = vmatprep.subr.bf16.mxu1 %v2742_v44 }
  0x47   : > { %1404 = vmatpush1.bf16.msra.mxu1 %v2740_v46 }
  0x48   : > { %1405 = vmatprep.subr.bf16.mxu1 %v2746_v47 }
  0x49   : > { %2581 = vmatmul.mubr.msk.bf16.gmra.mrb[28].mxu0 %vm531_vm0, %v2678_v39  ;;  %v2756_v39 = vld [vmem:[%s3811_s5 + $0x28] sm:$0xff]  }
  0x4a   : > { %740 = vmatprep.mubr.bf16.mxu0 %v2903_v2  ;;  %2597 = vmatmul.mubr.msk.bf16.gmra.mrb[28].mxu1 %vm531_vm0, %v2715_v48 }
  0x4b   : > { %900 = vmatprep.mubr.bf16.mxu1 %v2903_v2  ;;  %1406 = vmatpush1.bf16.msra.mxu1 %v2744_v49 }
  0x4c   : > { %1407 = vmatprep.subr.bf16.mxu1 %v2750_v56  ;;  %2068 = vmatpush1.bf16.msra.mxu0 %v2756_v39  ;;  %v2758_v39 = vld [vmem:[%s3811_s5 + $0x38] sm:$0xff]  }
  0x4d   : > { %2069 = vmatprep.subr.bf16.mxu0 %v2903_v2 }
  0x4f   : > { %1408 = vmatpush1.bf16.msra.mxu1 %v2748_v57 }
  0x50   : > { %2070 = vmatpush1.bf16.msra.mxu0 %v2757_v5 }
  0x51   : > { %2582 = vmatmul.mubr.msk.bf16.gmra.mrb[32].mxu0 %vm531_vm0, %v2679_v45  ;;  %2071 = vmatprep.subr.bf16.mxu0 %v2903_v2 }
  0x52   : > { %750 = vmatprep.mubr.bf16.mxu0 %v2903_v2  ;;  %2598 = vmatmul.mubr.msk.bf16.gmra.mrb[32].mxu1 %vm531_vm0, %v2719_v51 }
  0x53   : > { %910 = vmatprep.mubr.bf16.mxu1 %v2903_v2 }
  0x54   : > { %2072 = vmatpush1.bf16.msra.mxu0 %v2758_v39 }
  0x55   : > { %2073 = vmatprep.subr.bf16.mxu0 %v2903_v2 }
  0x59   : > { %2583 = vmatmul.mubr.msk.bf16.gmra.mrb[36].mxu0 %vm531_vm0, %v2680_v50 }
  0x5a   : > { %760 = vmatprep.mubr.bf16.mxu0 %v2903_v2  ;;  %2599 = vmatmul.mubr.msk.bf16.gmra.mrb[36].mxu1 %vm531_vm0, %v2723_v53 }
  0x5b   : > { %920 = vmatprep.mubr.bf16.mxu1 %v2903_v2 }
  0x61   : > { %2584 = vmatmul.mubr.msk.bf16.gmra.mrb[40].mxu0 %vm531_vm0, %v2681_v52 }
  0x62   : > { %770 = vmatprep.mubr.bf16.mxu0 %v2903_v2  ;;  %2600 = vmatmul.mubr.msk.bf16.gmra.mrb[40].mxu1 %vm531_vm0, %v2727_v55 }
  0x63   : > { %930 = vmatprep.mubr.bf16.mxu1 %v2903_v2 }
  0x69   : > { %2585 = vmatmul.mubr.msk.bf16.gmra.mrb[44].mxu0 %vm531_vm0, %v2682_v54 }
  0x6a   : > { %780 = vmatprep.mubr.bf16.mxu0 %v2903_v2  ;;  %2601 = vmatmul.mubr.msk.bf16.gmra.mrb[44].mxu1 %vm531_vm0, %v2731_v59 }
  0x6b   : > { %940 = vmatprep.mubr.bf16.mxu1 %v2903_v2 }
  0x71   : > { %2586 = vmatmul.mubr.msk.bf16.gmra.mrb[48].mxu0 %vm531_vm0, %v2687_v58 }
  0x72   : > { %790 = vmatprep.mubr.bf16.mxu0 %v2903_v2  ;;  %2602 = vmatmul.mubr.msk.bf16.gmra.mrb[48].mxu1 %vm531_vm0, %v2735_v61 }
  0x73   : > { %950 = vmatprep.mubr.bf16.mxu1 %v2903_v2 }
  0x79   : > { %2587 = vmatmul.mubr.msk.bf16.gmra.mrb[52].mxu0 %vm531_vm0, %v2692_v60 }
  0x7a   : > { %800 = vmatprep.mubr.bf16.mxu0 %v2903_v2  ;;  %2603 = vmatmul.mubr.msk.bf16.gmra.mrb[52].mxu1 %vm531_vm0, %v2739_v63 }
  0x7b   : > { %960 = vmatprep.mubr.bf16.mxu1 %v2903_v2 }
  0x81   : > { %2588 = vmatmul.mubr.msk.bf16.gmra.mrb[56].mxu0 %vm531_vm0, %v2697_v62 }
  0x82   : > { %810 = vmatprep.mubr.bf16.mxu0 %v2903_v2  ;;  %2604 = vmatmul.mubr.msk.bf16.gmra.mrb[56].mxu1 %vm531_vm0, %v2743_v1 }
  0x83   : > { %970 = vmatprep.mubr.bf16.mxu1 %v2903_v2 }
  0x89   : > { %2589 = vmatmul.mubr.msk.bf16.gmra.mrb[60].mxu0 %vm531_vm0, %v2702_v0 }
  0x8a   : > { %2605 = vmatmul.mubr.msk.bf16.gmra.mrb[60].mxu1 %vm531_vm0, %v2747_v3 }
  0xe4   : > { %v662_v14 = vpop.f32.mrb[0].mxu0 }
  0xe5   : > { %v663_v16 = vadd.f32 %v662_v14, %v3179_v12  ;;  %v664_v17 = vpop.f32.mrb[1].mxu0  ;;  %v822_v38 = vpop.f32.mrb[0].mxu1 }
  0xe6   : > { %v665_v18 = vadd.f32 %v664_v17, %v3183_v13  ;;  %v666_v19 = vpop.f32.mrb[2].mxu0  ;;  %v823_v42 = vadd.f32 %v822_v38, %v3179_v12  ;;  %v824_v43 = vpop.f32.mrb[1].mxu1 }
  0xe7   : > { %v667_v20 = vadd.f32 %v666_v19, %v3179_v12  ;;  %v668_v21 = vpop.f32.mrb[3].mxu0  ;;  %v981_v24 = vmax.f32 %v663_v16, 0.0  ;;  %v825_v46 = vadd.f32 %v824_v43, %v3183_v13  ;;  %v826_v47 = vpop.f32.mrb[2].mxu1 }
  0xe8   : > { %v669_v22 = vadd.f32 %v668_v21, %v3183_v13  ;;  %v982_v26 = vmax.f32 %v665_v18, 0.0  ;;  %v1045_v49 = vmax.f32 %v823_v42, 0.0  ;;  %v827_v50 = vadd.f32 %v826_v47, %v3179_v12  ;;  %v828_v51 = vpop.f32.mrb[3].mxu1 }
  0xe9   : > { %v983_v25 = vmax.f32 %v667_v20, 0.0  ;;  %v1046_v54 = vmax.f32 %v825_v46, 0.0  ;;  %v829_v55 = vadd.f32 %v828_v51, %v3183_v13 }
  0xea   : > { %v984_v27 = vmax.f32 %v669_v22, 0.0  ;;  %v1047_v58 = vmax.f32 %v827_v50, 0.0 }
  0xeb   : > { %v1109_v28 = vpack.c.bf16 %v983_v25, %v981_v24  ;;  %v1048_v61 = vmax.f32 %v829_v55, 0.0 }
  0xec   : > { %v1110_v29 = vpack.c.bf16 %v984_v27, %v982_v26  ;;  %v672_v30 = vpop.f32.mrb[4].mxu0  ;;  %v3213_v0 = vpack.c.bf16 %v1047_v58, %v1045_v49 }
  0xed   : > { %v673_v31 = vadd.f32 %v672_v30, %v3179_v12  ;;  %v674_v32 = vpop.f32.mrb[5].mxu0  ;;  %v3216_v3 = vpack.c.bf16 %v1048_v61, %v1046_v54  ;;  %v832_v4 = vpop.f32.mrb[4].mxu1 }
  0xee   : > { %v675_v33 = vadd.f32 %v674_v32, %v3183_v13  ;;  %v676_v34 = vpop.f32.mrb[6].mxu0  ;;  %1409 = vmatprep.mubr.bf16.mxu1 %v1110_v29  ;;  %v833_v11 = vadd.f32 %v832_v4, %v3179_v12  ;;  %v834_v14 = vpop.f32.mrb[5].mxu1 }
  0xef   : > { %v677_v35 = vadd.f32 %v676_v34, %v3179_v12  ;;  %v678_v36 = vpop.f32.mrb[7].mxu0  ;;  %1410 = vmatmul.mubr.bf16.vlgmr.msra.gmra.mrb[64].mxu1 %v1109_v28  ;;  %v985_v40 = vmax.f32 %v673_v31, 0.0  ;;  %v835_v17 = vadd.f32 %v834_v14, %v3183_v13  ;;  %v836_v18 = vpop.f32.mrb[6].mxu1 }
  0xf0   : > { %v679_v37 = vadd.f32 %v678_v36, %v3183_v13  ;;  %v986_v44 = vmax.f32 %v675_v33, 0.0  ;;  %v1049_v20 = vmax.f32 %v833_v11, 0.0  ;;  %v837_v21 = vadd.f32 %v836_v18, %v3179_v12  ;;  %v838_v22 = vpop.f32.mrb[7].mxu1 }
  0xf1   : > { %v987_v41 = vmax.f32 %v677_v35, 0.0  ;;  %v1050_v25 = vmax.f32 %v835_v17, 0.0  ;;  %v839_v26 = vadd.f32 %v838_v22, %v3183_v13 }
  0xf2   : > { %v988_v45 = vmax.f32 %v679_v37, 0.0  ;;  %v1051_v29 = vmax.f32 %v837_v21, 0.0 }
  0xf3   : > { %v1111_v48 = vpack.c.bf16 %v987_v41, %v985_v40  ;;  %v1052_v32 = vmax.f32 %v839_v26, 0.0 }
  0xf4   : > { %v1112_v52 = vpack.c.bf16 %v988_v45, %v986_v44  ;;  %v682_v53 = vpop.f32.mrb[8].mxu0  ;;  %v3229_v35 = vpack.c.bf16 %v1051_v29, %v1049_v20 }
  0xf5   : > { %v683_v56 = vadd.f32 %v682_v53, %v3179_v12  ;;  %v684_v57 = vpop.f32.mrb[9].mxu0  ;;  %v3232_v37 = vpack.c.bf16 %v1052_v32, %v1050_v25  ;;  %v842_v38 = vpop.f32.mrb[8].mxu1 }
  0xf6   : > { %v685_v59 = vadd.f32 %v684_v57, %v3183_v13  ;;  %v686_v60 = vpop.f32.mrb[10].mxu0  ;;  %1419 = vmatprep.mubr.bf16.mxu1 %v1112_v52  ;;  %v843_v42 = vadd.f32 %v842_v38, %v3179_v12  ;;  %v844_v43 = vpop.f32.mrb[9].mxu1 }
  0xf7   : > { %v687_v62 = vadd.f32 %v686_v60, %v3179_v12  ;;  %v688_v63 = vpop.f32.mrb[11].mxu0  ;;  %1420 = vmatmul.mubr.bf16.gmra.mrb[68].mxu1 %v1111_v48  ;;  %v989_v6 = vmax.f32 %v683_v56, 0.0  ;;  %v845_v46 = vadd.f32 %v844_v43, %v3183_v13  ;;  %v846_v47 = vpop.f32.mrb[10].mxu1  ;;  %v2760_v43 = vld [vmem:[%s3811_s5 + $0x48] sm:$0xff]  }
  0xf8   : > { %v689_v1 = vadd.f32 %v688_v63, %v3183_v13  ;;  %v990_v15 = vmax.f32 %v685_v59, 0.0  ;;  %v1053_v49 = vmax.f32 %v843_v42, 0.0  ;;  %v847_v50 = vadd.f32 %v846_v47, %v3179_v12  ;;  %v848_v51 = vpop.f32.mrb[11].mxu1 }
  0xf9   : > { %v991_v9 = vmax.f32 %v687_v62, 0.0  ;;  %v1054_v54 = vmax.f32 %v845_v46, 0.0  ;;  %v849_v55 = vadd.f32 %v848_v51, %v3183_v13 }
  0xfa   : > { %v992_v16 = vmax.f32 %v689_v1, 0.0  ;;  %v1055_v58 = vmax.f32 %v847_v50, 0.0 }
  0xfb   : > { %v1113_v19 = vpack.c.bf16 %v991_v9, %v989_v6  ;;  %v1056_v61 = vmax.f32 %v849_v55, 0.0  ;;  %v2759_v9 = vld [vmem:[%s3811_s5 + $0x40] sm:$0xff]  }
  0xfc   : > { %v1114_v23 = vpack.c.bf16 %v992_v16, %v990_v15  ;;  %v692_v24 = vpop.f32.mrb[12].mxu0  ;;  %v3245_v1 = vpack.c.bf16 %v1055_v58, %v1053_v49  ;;  %2074 = vmatpush1.bf16.msra.mxu0 %v2759_v9 }
  0xfd   : > { %v693_v27 = vadd.f32 %v692_v24, %v3179_v12  ;;  %v694_v28 = vpop.f32.mrb[13].mxu0  ;;  %v3248_v5 = vpack.c.bf16 %v1056_v61, %v1054_v54  ;;  %v852_v6 = vpop.f32.mrb[12].mxu1  ;;  %2075 = vmatprep.subr.bf16.mxu0 %v2903_v2 }
  0xfe   : > { %v695_v30 = vadd.f32 %v694_v28, %v3183_v13  ;;  %v696_v31 = vpop.f32.mrb[14].mxu0  ;;  %1429 = vmatprep.mubr.bf16.mxu1 %v1114_v23  ;;  %v853_v15 = vadd.f32 %v852_v6, %v3179_v12  ;;  %v854_v16 = vpop.f32.mrb[13].mxu1 }
  0xff   : > { %v697_v33 = vadd.f32 %v696_v31, %v3179_v12  ;;  %v698_v34 = vpop.f32.mrb[15].mxu0  ;;  %1430 = vmatmul.mubr.bf16.gmra.mrb[72].mxu1 %v1113_v19  ;;  %v993_v40 = vmax.f32 %v693_v27, 0.0  ;;  %v855_v19 = vadd.f32 %v854_v16, %v3183_v13  ;;  %v856_v20 = vpop.f32.mrb[14].mxu1 }
 0x100   : > { %v699_v36 = vadd.f32 %v698_v34, %v3183_v13  ;;  %v994_v44 = vmax.f32 %v695_v30, 0.0  ;;  %v1057_v22 = vmax.f32 %v853_v15, 0.0  ;;  %v857_v23 = vadd.f32 %v856_v20, %v3179_v12  ;;  %v858_v24 = vpop.f32.mrb[15].mxu1  ;;  %2076 = vmatpush1.bf16.msra.mxu0 %v2760_v43 }
 0x101   : > { %v995_v41 = vmax.f32 %v697_v33, 0.0  ;;  %v1058_v27 = vmax.f32 %v855_v19, 0.0  ;;  %v859_v28 = vadd.f32 %v858_v24, %v3183_v13  ;;  %2077 = vmatprep.subr.bf16.mxu0 %v2903_v2 }
 0x102   : > { %v996_v45 = vmax.f32 %v699_v36, 0.0  ;;  %v1059_v31 = vmax.f32 %v857_v23, 0.0 }
 0x103   : > { %v1115_v48 = vpack.c.bf16 %v995_v41, %v993_v40  ;;  %v1060_v34 = vmax.f32 %v859_v28, 0.0 }
 0x104   : > { %v1116_v52 = vpack.c.bf16 %v996_v45, %v994_v44  ;;  %v702_v53 = vpop.f32.mrb[16].mxu0  ;;  %v3261_v39 = vpack.c.bf16 %v1059_v31, %v1057_v22 }
 0x105   : > { %v703_v56 = vadd.f32 %v702_v53, %v3179_v12  ;;  %v704_v57 = vpop.f32.mrb[17].mxu0  ;;  %v3264_v41 = vpack.c.bf16 %v1060_v34, %v1058_v27  ;;  %v862_v42 = vpop.f32.mrb[16].mxu1 }
 0x106   : > { %v705_v59 = vadd.f32 %v704_v57, %v3183_v13  ;;  %v706_v60 = vpop.f32.mrb[18].mxu0  ;;  %1439 = vmatprep.mubr.bf16.mxu1 %v1116_v52  ;;  %v863_v46 = vadd.f32 %v862_v42, %v3179_v12  ;;  %v864_v47 = vpop.f32.mrb[17].mxu1 }
 0x107   : > { %v707_v62 = vadd.f32 %v706_v60, %v3179_v12  ;;  %v708_v63 = vpop.f32.mrb[19].mxu0  ;;  %1440 = vmatmul.mubr.bf16.gmra.mrb[76].mxu1 %v1115_v48  ;;  %v997_v11 = vmax.f32 %v703_v56, 0.0  ;;  %v865_v50 = vadd.f32 %v864_v47, %v3183_v13  ;;  %v866_v51 = vpop.f32.mrb[18].mxu1 }
 0x108   : > { %v709_v4 = vadd.f32 %v708_v63, %v3183_v13  ;;  %v998_v17 = vmax.f32 %v705_v59, 0.0  ;;  %v1061_v53 = vmax.f32 %v863_v46, 0.0  ;;  %v867_v54 = vadd.f32 %v866_v51, %v3179_v12  ;;  %v868_v55 = vpop.f32.mrb[19].mxu1  ;;  %v2762_v51 = vld [vmem:[%s3811_s5 + $0x58] sm:$0xff]  }
 0x109   : > { %v999_v14 = vmax.f32 %v707_v62, 0.0  ;;  %v1062_v58 = vmax.f32 %v865_v50, 0.0  ;;  %v869_v59 = vadd.f32 %v868_v55, %v3183_v13 }
 0x10a   : > { %v1000_v18 = vmax.f32 %v709_v4, 0.0  ;;  %v1063_v62 = vmax.f32 %v867_v54, 0.0 }
 0x10b   : > { %v1117_v21 = vpack.c.bf16 %v999_v14, %v997_v11  ;;  %v1064_v6 = vmax.f32 %v869_v59, 0.0 }
 0x10c   : > { %v1118_v25 = vpack.c.bf16 %v1000_v18, %v998_v17  ;;  %v712_v26 = vpop.f32.mrb[20].mxu0  ;;  %v3277_v14 = vpack.c.bf16 %v1063_v62, %v1061_v53  ;;  %v2761_v18 = vld [vmem:[%s3811_s5 + $0x50] sm:$0xff]  }
 0x10d   : > { %v713_v29 = vadd.f32 %v712_v26, %v3179_v12  ;;  %v714_v30 = vpop.f32.mrb[21].mxu0  ;;  %v3280_v16 = vpack.c.bf16 %v1064_v6, %v1062_v58  ;;  %v872_v17 = vpop.f32.mrb[20].mxu1  ;;  %2078 = vmatpush1.bf16.msra.mxu0 %v2761_v18 }
 0x10e   : > { %v715_v32 = vadd.f32 %v714_v30, %v3183_v13  ;;  %v716_v33 = vpop.f32.mrb[22].mxu0  ;;  %1449 = vmatprep.mubr.bf16.mxu1 %v1118_v25  ;;  %v874_v22 = vpop.f32.mrb[21].mxu1  ;;  %2079 = vmatprep.subr.bf16.mxu0 %v2903_v2 }
 0x10f   : > { %v717_v36 = vadd.f32 %v716_v33, %v3179_v12  ;;  %v718_v38 = vpop.f32.mrb[23].mxu0  ;;  %1450 = vmatmul.mubr.bf16.gmra.mrb[80].mxu1 %v1117_v21  ;;  %v1001_v44 = vmax.f32 %v713_v29, 0.0  ;;  %v873_v21 = vadd.f32 %v872_v17, %v3179_v12  ;;  %v875_v25 = vadd.f32 %v874_v22, %v3183_v13  ;;  %v876_v26 = vpop.f32.mrb[22].mxu1 }
 0x110   : > { %v719_v40 = vadd.f32 %v718_v38, %v3183_v13  ;;  %v1002_v48 = vmax.f32 %v715_v32, 0.0  ;;  %v877_v29 = vadd.f32 %v876_v26, %v3179_v12  ;;  %v878_v30 = vpop.f32.mrb[23].mxu1 }
 0x111   : > { %v1003_v45 = vmax.f32 %v717_v36, 0.0  ;;  %v1065_v28 = vmax.f32 %v873_v21, 0.0  ;;  %v1066_v33 = vmax.f32 %v875_v25, 0.0  ;;  %v879_v34 = vadd.f32 %v878_v30, %v3183_v13  ;;  %2080 = vmatpush1.bf16.msra.mxu0 %v2762_v51 }
 0x112   : > { %v1004_v49 = vmax.f32 %v719_v40, 0.0  ;;  %v1067_v40 = vmax.f32 %v877_v29, 0.0  ;;  %2081 = vmatprep.subr.bf16.mxu0 %v2903_v2 }
 0x113   : > { %v1119_v52 = vpack.c.bf16 %v1003_v45, %v1001_v44  ;;  %v1068_v44 = vmax.f32 %v879_v34, 0.0 }
 0x114   : > { %v1120_v56 = vpack.c.bf16 %v1004_v49, %v1002_v48  ;;  %v722_v57 = vpop.f32.mrb[24].mxu0  ;;  %v3293_v47 = vpack.c.bf16 %v1067_v40, %v1065_v28  ;;  %v2763_v28 = vld [vmem:[%s3811_s5 + $0x60] sm:$0xff]  }
 0x115   : > { %v723_v60 = vadd.f32 %v722_v57, %v3179_v12  ;;  %v724_v61 = vpop.f32.mrb[25].mxu0  ;;  %v3296_v49 = vpack.c.bf16 %v1068_v44, %v1066_v33  ;;  %v882_v50 = vpop.f32.mrb[24].mxu1  ;;  %2082 = vmatpush1.bf16.msra.mxu0 %v2763_v28 }
 0x116   : > { %v725_v63 = vadd.f32 %v724_v61, %v3183_v13  ;;  %v726_v4 = vpop.f32.mrb[26].mxu0  ;;  %1459 = vmatprep.mubr.bf16.mxu1 %v1120_v56  ;;  %v883_v54 = vadd.f32 %v882_v50, %v3179_v12  ;;  %v884_v55 = vpop.f32.mrb[25].mxu1  ;;  %2083 = vmatprep.subr.bf16.mxu0 %v2903_v2 }
 0x117   : > { %v727_v9 = vadd.f32 %v726_v4, %v3179_v12  ;;  %v728_v11 = vpop.f32.mrb[27].mxu0  ;;  %1460 = vmatmul.mubr.bf16.gmra.mrb[84].mxu1 %v1119_v52  ;;  %v1005_v19 = vmax.f32 %v723_v60, 0.0  ;;  %v885_v58 = vadd.f32 %v884_v55, %v3183_v13  ;;  %v886_v59 = vpop.f32.mrb[26].mxu1 }
 0x118   : > { %v729_v15 = vadd.f32 %v728_v11, %v3183_v13  ;;  %v1006_v23 = vmax.f32 %v725_v63, 0.0  ;;  %v1069_v61 = vmax.f32 %v883_v54, 0.0  ;;  %v887_v62 = vadd.f32 %v886_v59, %v3179_v12  ;;  %v888_v63 = vpop.f32.mrb[27].mxu1 }
 0x119   : > { %v1007_v20 = vmax.f32 %v727_v9, 0.0  ;;  %v1070_v9 = vmax.f32 %v885_v58, 0.0  ;;  %v889_v11 = vadd.f32 %v888_v63, %v3183_v13  ;;  %v2764_v63 = vld [vmem:[%s3811_s5 + $0x68] sm:$0xff]  }
 0x11a   : > { %v1008_v24 = vmax.f32 %v729_v15, 0.0  ;;  %v1071_v18 = vmax.f32 %v887_v62, 0.0  ;;  %2084 = vmatpush1.bf16.msra.mxu0 %v2764_v63 }
 0x11b   : > { %v1121_v27 = vpack.c.bf16 %v1007_v20, %v1005_v19  ;;  %v1072_v21 = vmax.f32 %v889_v11, 0.0  ;;  %2085 = vmatprep.subr.bf16.mxu0 %v2903_v2 }
 0x11c   : > { %v1122_v31 = vpack.c.bf16 %v1008_v24, %v1006_v23  ;;  %v732_v32 = vpop.f32.mrb[28].mxu0  ;;  %v3309_v24 = vpack.c.bf16 %v1071_v18, %v1069_v61 }
 0x11d   : > { %v733_v36 = vadd.f32 %v732_v32, %v3179_v12  ;;  %v734_v38 = vpop.f32.mrb[29].mxu0  ;;  %v3312_v26 = vpack.c.bf16 %v1072_v21, %v1070_v9 }
 0x11e   : > { %v735_v42 = vadd.f32 %v734_v38, %v3183_v13  ;;  %v736_v43 = vpop.f32.mrb[30].mxu0  ;;  %1469 = vmatprep.mubr.bf16.mxu1 %v1122_v31 }
 0x11f   : > { %v737_v45 = vadd.f32 %v736_v43, %v3179_v12  ;;  %v738_v46 = vpop.f32.mrb[31].mxu0  ;;  %1470 = vmatmul.mubr.bf16.gmra.mrb[88].mxu1 %v1121_v27  ;;  %v1009_v52 = vmax.f32 %v733_v36, 0.0  ;;  %v892_v27 = vpop.f32.mrb[28].mxu1 }
 0x120   : > { %v739_v48 = vadd.f32 %v738_v46, %v3183_v13  ;;  %v1010_v56 = vmax.f32 %v735_v42, 0.0  ;;  %v893_v31 = vadd.f32 %v892_v27, %v3179_v12  ;;  %v894_v32 = vpop.f32.mrb[29].mxu1 }
 0x121   : > { %v1011_v53 = vmax.f32 %v737_v45, 0.0  ;;  %v895_v36 = vadd.f32 %v894_v32, %v3183_v13  ;;  %v896_v38 = vpop.f32.mrb[30].mxu1 }
 0x122   : > { %v1012_v57 = vmax.f32 %v739_v48, 0.0  ;;  %v1073_v42 = vmax.f32 %v893_v31, 0.0  ;;  %v897_v43 = vadd.f32 %v896_v38, %v3179_v12  ;;  %v898_v44 = vpop.f32.mrb[31].mxu1 }
 0x123   : > { %v1123_v60 = vpack.c.bf16 %v1011_v53, %v1009_v52  ;;  %v1074_v48 = vmax.f32 %v895_v36, 0.0  ;;  %v899_v50 = vadd.f32 %v898_v44, %v3183_v13 }
 0x124   : > { %v1124_v4 = vpack.c.bf16 %v1012_v57, %v1010_v56  ;;  %v742_v6 = vpop.f32.mrb[32].mxu0  ;;  %v1075_v53 = vmax.f32 %v897_v43, 0.0 }
 0x125   : > { %v743_v15 = vadd.f32 %v742_v6, %v3179_v12  ;;  %v744_v17 = vpop.f32.mrb[33].mxu0  ;;  %v1076_v56 = vmax.f32 %v899_v50, 0.0  ;;  %v902_v62 = vpop.f32.mrb[32].mxu1 }
 0x126   : > { %v745_v19 = vadd.f32 %v744_v17, %v3183_v13  ;;  %v746_v20 = vpop.f32.mrb[34].mxu0  ;;  %1479 = vmatprep.mubr.bf16.mxu1 %v1124_v4  ;;  %v3325_v59 = vpack.c.bf16 %v1075_v53, %v1073_v42  ;;  %v903_v9 = vadd.f32 %v902_v62, %v3179_v12  ;;  %v904_v11 = vpop.f32.mrb[33].mxu1 }
 0x127   : > { %v747_v22 = vadd.f32 %v746_v20, %v3179_v12  ;;  %v748_v23 = vpop.f32.mrb[35].mxu0  ;;  %1480 = vmatmul.mubr.bf16.gmra.mrb[92].mxu1 %v1123_v60  ;;  %v1013_v29 = vmax.f32 %v743_v15, 0.0  ;;  %v3328_v61 = vpack.c.bf16 %v1076_v56, %v1074_v48  ;;  %v905_v18 = vadd.f32 %v904_v11, %v3183_v13 }
 0x128   : > { %v749_v25 = vadd.f32 %v748_v23, %v3183_v13  ;;  %v1014_v33 = vmax.f32 %v745_v19, 0.0  ;;  %v906_v19 = vpop.f32.mrb[34].mxu1  ;;  %v1077_v21 = vmax.f32 %v903_v9, 0.0 }
 0x129   : > { %v1015_v30 = vmax.f32 %v747_v22, 0.0  ;;  %v907_v22 = vadd.f32 %v906_v19, %v3179_v12  ;;  %v908_v23 = vpop.f32.mrb[35].mxu1  ;;  %v1078_v28 = vmax.f32 %v905_v18, 0.0 }
 0x12a   : > { %v1016_v34 = vmax.f32 %v749_v25, 0.0 }
 0x12b   : > { %v1125_v40 = vpack.c.bf16 %v1015_v30, %v1013_v29  ;;  %v909_v29 = vadd.f32 %v908_v23, %v3183_v13  ;;  %v1079_v32 = vmax.f32 %v907_v22, 0.0 }
 0x12c   : > { %v1126_v45 = vpack.c.bf16 %v1016_v34, %v1014_v33  ;;  %v752_v46 = vpop.f32.mrb[36].mxu0 }
 0x12d   : > { %v753_v51 = vadd.f32 %v752_v46, %v3179_v12  ;;  %v754_v52 = vpop.f32.mrb[37].mxu0  ;;  %v1080_v36 = vmax.f32 %v909_v29, 0.0  ;;  %v3341_v42 = vpack.c.bf16 %v1079_v32, %v1077_v21  ;;  %v2765_v46 = vld [vmem:[%s3811_s5 + $0x70] sm:$0xff]  }
 0x12e   : > { %v755_v54 = vadd.f32 %v754_v52, %v3183_v13  ;;  %v756_v55 = vpop.f32.mrb[38].mxu0  ;;  %1489 = vmatprep.mubr.bf16.mxu1 %v1126_v45  ;;  %v912_v45 = vpop.f32.mrb[36].mxu1  ;;  %2086 = vmatpush1.bf16.msra.mxu0 %v2765_v46 }
 0x12f   : > { %v757_v57 = vadd.f32 %v756_v55, %v3179_v12  ;;  %v758_v58 = vpop.f32.mrb[39].mxu0  ;;  %1490 = vmatmul.mubr.bf16.gmra.mrb[96].mxu1 %v1125_v40  ;;  %v1017_v4 = vmax.f32 %v753_v51, 0.0  ;;  %v3344_v44 = vpack.c.bf16 %v1080_v36, %v1078_v28  ;;  %v913_v51 = vadd.f32 %v912_v45, %v3179_v12  ;;  %v914_v52 = vpop.f32.mrb[37].mxu1  ;;  %2087 = vmatprep.subr.bf16.mxu0 %v2903_v2 }
 0x130   : > { %v759_v60 = vadd.f32 %v758_v58, %v3183_v13  ;;  %v1018_v15 = vmax.f32 %v755_v54, 0.0  ;;  %v915_v55 = vadd.f32 %v914_v52, %v3183_v13  ;;  %v916_v56 = vpop.f32.mrb[38].mxu1 }
 0x131   : > { %v1019_v6 = vmax.f32 %v757_v57, 0.0  ;;  %v1081_v58 = vmax.f32 %v913_v51, 0.0  ;;  %v918_v62 = vpop.f32.mrb[39].mxu1 }
 0x132   : > { %v1020_v17 = vmax.f32 %v759_v60, 0.0  ;;  %v917_v60 = vadd.f32 %v916_v56, %v3179_v12  ;;  %v919_v9 = vadd.f32 %v918_v62, %v3183_v13 }
 0x133   : > { %v1127_v20 = vpack.c.bf16 %v1019_v6, %v1017_v4  ;;  %v1082_v6 = vmax.f32 %v915_v55, 0.0 }
 0x134   : > { %v1128_v25 = vpack.c.bf16 %v1020_v17, %v1018_v15  ;;  %v762_v27 = vpop.f32.mrb[40].mxu0  ;;  %v1083_v17 = vmax.f32 %v917_v60, 0.0 }
 0x135   : > { %v763_v30 = vadd.f32 %v762_v27, %v3179_v12  ;;  %v764_v31 = vpop.f32.mrb[41].mxu0  ;;  %v922_v27 = vpop.f32.mrb[40].mxu1 }
 0x136   : > { %v765_v33 = vadd.f32 %v764_v31, %v3183_v13  ;;  %v766_v34 = vpop.f32.mrb[42].mxu0  ;;  %1499 = vmatprep.mubr.bf16.mxu1 %v1128_v25  ;;  %v3357_v23 = vpack.c.bf16 %v1083_v17, %v1081_v58  ;;  %v924_v31 = vpop.f32.mrb[41].mxu1 }
 0x137   : > { %v767_v38 = vadd.f32 %v766_v34, %v3179_v12  ;;  %v768_v40 = vpop.f32.mrb[43].mxu0  ;;  %1500 = vmatmul.mubr.bf16.gmra.mrb[100].mxu1 %v1127_v20  ;;  %v1021_v48 = vmax.f32 %v763_v30, 0.0  ;;  %v1084_v20 = vmax.f32 %v919_v9, 0.0  ;;  %v923_v30 = vadd.f32 %v922_v27, %v3179_v12  ;;  %v926_v36 = vpop.f32.mrb[42].mxu1  ;;  %v2766_v9 = vld [vmem:[%s3811_s5 + $0x78] sm:$0xff]  }
 0x138   : > { %v769_v43 = vadd.f32 %v768_v40, %v3183_v13  ;;  %v1022_v53 = vmax.f32 %v765_v33, 0.0  ;;  %v925_v34 = vadd.f32 %v924_v31, %v3183_v13  ;;  %v928_v45 = vpop.f32.mrb[43].mxu1  ;;  %2088 = vmatpush1.bf16.msra.mxu0 %v2766_v9 }
 0x139   : > { %v1023_v50 = vmax.f32 %v767_v38, 0.0  ;;  %v3360_v25 = vpack.c.bf16 %v1084_v20, %v1082_v6  ;;  %v1085_v40 = vmax.f32 %v923_v30, 0.0  ;;  %v929_v51 = vadd.f32 %v928_v45, %v3183_v13 }
 0x13a   : > { %v1024_v54 = vmax.f32 %v769_v43, 0.0  ;;  %v927_v43 = vadd.f32 %v926_v36, %v3179_v12 }
 0x13b   : > { %v1129_v57 = vpack.c.bf16 %v1023_v50, %v1021_v48  ;;  %v1086_v50 = vmax.f32 %v925_v34, 0.0 }
 0x13c   : > { %v1130_v63 = vpack.c.bf16 %v1024_v54, %v1022_v53  ;;  %v772_v4 = vpop.f32.mrb[44].mxu0  ;;  %v1087_v54 = vmax.f32 %v927_v43, 0.0 }
 0x13d   : > { %v773_v11 = vadd.f32 %v772_v4, %v3179_v12  ;;  %v774_v15 = vpop.f32.mrb[45].mxu0  ;;  %v932_v6 = vpop.f32.mrb[44].mxu1 }
 0x13e   : > { %v775_v18 = vadd.f32 %v774_v15, %v3183_v13  ;;  %v776_v19 = vpop.f32.mrb[46].mxu0  ;;  %1509 = vmatprep.mubr.bf16.mxu1 %v1130_v63  ;;  %v3369_v62 = vpack.c.bf16 %v1087_v54, %v1085_v40  ;;  %v933_v17 = vadd.f32 %v932_v6, %v3179_v12 }
 0x13f   : > { %v777_v21 = vadd.f32 %v776_v19, %v3179_v12  ;;  %v778_v22 = vpop.f32.mrb[47].mxu0  ;;  %1510 = vmatmul.mubr.bf16.gmra.mrb[104].mxu1 %v1129_v57  ;;  %v1025_v28 = vmax.f32 %v773_v11, 0.0  ;;  %v1088_v57 = vmax.f32 %v929_v51, 0.0 }
 0x140   : > { %v779_v2 = vadd.f32 %v778_v22, %v3183_v13  ;;  %v1026_v32 = vmax.f32 %v775_v18, 0.0  ;;  %v934_v18 = vpop.f32.mrb[45].mxu1  ;;  %v1089_v27 = vmax.f32 %v933_v17, 0.0 }
 0x141   : > { %v1027_v29 = vmax.f32 %v777_v21, 0.0  ;;  %v3372_v4 = vpack.c.bf16 %v1088_v57, %v1086_v50  ;;  %v935_v21 = vadd.f32 %v934_v18, %v3183_v13  ;;  %v936_v22 = vpop.f32.mrb[46].mxu1 }
 0x142   : > { %v1028_v33 = vmax.f32 %v779_v2, 0.0 }
 0x143   : > { %v1131_v38 = vpack.c.bf16 %v1027_v29, %v1025_v28  ;;  %v937_v28 = vadd.f32 %v936_v22, %v3179_v12  ;;  %v938_v29 = vpop.f32.mrb[47].mxu1 }
 0x144   : > { %v1132_v46 = vpack.c.bf16 %v1028_v33, %v1026_v32  ;;  %v782_v48 = vpop.f32.mrb[48].mxu0  ;;  %v1090_v32 = vmax.f32 %v935_v21, 0.0  ;;  %v939_v33 = vadd.f32 %v938_v29, %v3183_v13 }
 0x145   : > { %v783_v52 = vadd.f32 %v782_v48, %v3179_v12  ;;  %v784_v53 = vpop.f32.mrb[49].mxu0 }
 0x146   : > { %v785_v55 = vadd.f32 %v784_v53, %v3183_v13  ;;  %v786_v56 = vpop.f32.mrb[50].mxu0  ;;  %1519 = vmatprep.mubr.bf16.mxu1 %v1132_v46  ;;  %v1092_v45 = vmax.f32 %v939_v33, 0.0  ;;  %v942_v53 = vpop.f32.mrb[48].mxu1 }
 0x147   : > { %v787_v58 = vadd.f32 %v786_v56, %v3179_v12  ;;  %v788_v60 = vpop.f32.mrb[51].mxu0  ;;  %1520 = vmatmul.mubr.bf16.gmra.mrb[108].mxu1 %v1131_v38  ;;  %v1029_v11 = vmax.f32 %v783_v52, 0.0  ;;  %v1091_v38 = vmax.f32 %v937_v28, 0.0  ;;  %v943_v56 = vadd.f32 %v942_v53, %v3179_v12  ;;  %v944_v57 = vpop.f32.mrb[49].mxu1 }
 0x148   : > { %v789_v63 = vadd.f32 %v788_v60, %v3183_v13  ;;  %v1030_v19 = vmax.f32 %v785_v55, 0.0  ;;  %v3387_v52 = vpack.c.bf16 %v1092_v45, %v1090_v32  ;;  %v946_v6 = vpop.f32.mrb[50].mxu1 }
 0x149   : > { %v1031_v15 = vmax.f32 %v787_v58, 0.0  ;;  %v3384_v50 = vpack.c.bf16 %v1091_v38, %v1089_v27  ;;  %v948_v17 = vpop.f32.mrb[51].mxu1 }
 0x14a   : > { %v1032_v20 = vmax.f32 %v789_v63, 0.0  ;;  %v945_v63 = vadd.f32 %v944_v57, %v3183_v13  ;;  %v949_v21 = vadd.f32 %v948_v17, %v3183_v13 }
 0x14b   : > { %v1133_v2 = vpack.c.bf16 %v1031_v15, %v1029_v11  ;;  %v1093_v11 = vmax.f32 %v943_v56, 0.0  ;;  %v947_v15 = vadd.f32 %v946_v6, %v3179_v12 }
 0x14c   : > { %v1134_v30 = vpack.c.bf16 %v1032_v20, %v1030_v19  ;;  %v792_v31 = vpop.f32.mrb[52].mxu0  ;;  %v1094_v20 = vmax.f32 %v945_v63, 0.0 }
 0x14d   : > { %v793_v34 = vadd.f32 %v792_v31, %v3179_v12  ;;  %v794_v36 = vpop.f32.mrb[53].mxu0  ;;  %v1095_v27 = vmax.f32 %v947_v15, 0.0  ;;  %v952_v38 = vpop.f32.mrb[52].mxu1 }
 0x14e   : > { %v795_v40 = vadd.f32 %v794_v36, %v3183_v13  ;;  %v796_v43 = vpop.f32.mrb[54].mxu0  ;;  %1529 = vmatprep.mubr.bf16.mxu1 %v1134_v30  ;;  %v1096_v30 = vmax.f32 %v949_v21, 0.0  ;;  %v953_v45 = vadd.f32 %v952_v38, %v3179_v12 }
 0x14f   : > { %v797_v46 = vadd.f32 %v796_v43, %v3179_v12  ;;  %v798_v48 = vpop.f32.mrb[55].mxu0  ;;  %1530 = vmatmul.mubr.bf16.gmra.mrb[112].mxu1 %v1133_v2  ;;  %v1033_v54 = vmax.f32 %v793_v34, 0.0  ;;  %v3396_v33 = vpack.c.bf16 %v1095_v27, %v1093_v11 }
 0x150   : > { %v799_v51 = vadd.f32 %v798_v48, %v3183_v13  ;;  %v1034_v58 = vmax.f32 %v795_v40, 0.0  ;;  %v3399_v36 = vpack.c.bf16 %v1096_v30, %v1094_v20  ;;  %v1097_v56 = vmax.f32 %v953_v45, 0.0 }
 0x151   : > { %v1035_v55 = vmax.f32 %v797_v46, 0.0  ;;  %v954_v46 = vpop.f32.mrb[53].mxu1 }
 0x152   : > { %v1036_v60 = vmax.f32 %v799_v51, 0.0  ;;  %v955_v53 = vadd.f32 %v954_v46, %v3183_v13 }
 0x153   : > { %v1135_v9 = vpack.c.bf16 %v1035_v55, %v1033_v54  ;;  %v956_v54 = vpop.f32.mrb[54].mxu1 }
 0x154   : > { %v1136_v18 = vpack.c.bf16 %v1036_v60, %v1034_v58  ;;  %v802_v19 = vpop.f32.mrb[56].mxu0  ;;  %v957_v57 = vadd.f32 %v956_v54, %v3179_v12  ;;  %v958_v58 = vpop.f32.mrb[55].mxu1  ;;  %v1098_v6 = vmax.f32 %v955_v53, 0.0 }
 0x155   : > { %v803_v22 = vadd.f32 %v802_v19, %v3179_v12  ;;  %v804_v2 = vpop.f32.mrb[57].mxu0 }
 0x156   : > { %v805_v28 = vadd.f32 %v804_v2, %v3183_v13  ;;  %v806_v29 = vpop.f32.mrb[58].mxu0  ;;  %1539 = vmatprep.mubr.bf16.mxu1 %v1136_v18  ;;  %v1099_v17 = vmax.f32 %v957_v57, 0.0 }
 0x157   : > { %v807_v31 = vadd.f32 %v806_v29, %v3179_v12  ;;  %v808_v32 = vpop.f32.mrb[59].mxu0  ;;  %1540 = vmatmul.mubr.bf16.gmra.mrb[116].mxu1 %v1135_v9  ;;  %v1037_v40 = vmax.f32 %v803_v22, 0.0  ;;  %v959_v9 = vadd.f32 %v958_v58, %v3183_v13  ;;  %v962_v29 = vpop.f32.mrb[56].mxu1 }
 0x158   : > { %v809_v34 = vadd.f32 %v808_v32, %v3183_v13  ;;  %v1038_v48 = vmax.f32 %v805_v28, 0.0  ;;  %v3408_v2 = vpack.c.bf16 %v1099_v17, %v1097_v56  ;;  %v963_v32 = vadd.f32 %v962_v29, %v3179_v12 }
 0x159   : > { %v1039_v43 = vmax.f32 %v807_v31, 0.0  ;;  %v1100_v20 = vmax.f32 %v959_v9, 0.0 }
 0x15a   : > { %v1040_v51 = vmax.f32 %v809_v34, 0.0  ;;  %v964_v34 = vpop.f32.mrb[57].mxu1 }
 0x15b   : > { %v1137_v55 = vpack.c.bf16 %v1039_v43, %v1037_v40  ;;  %v3411_v28 = vpack.c.bf16 %v1100_v20, %v1098_v6  ;;  %v965_v43 = vadd.f32 %v964_v34, %v3183_v13  ;;  %v966_v45 = vpop.f32.mrb[58].mxu1 }
 0x15c   : > { %v1138_v60 = vpack.c.bf16 %v1040_v51, %v1038_v48  ;;  %v812_v63 = vpop.f32.mrb[60].mxu0  ;;  %v1101_v48 = vmax.f32 %v963_v32, 0.0  ;;  %v967_v51 = vadd.f32 %v966_v45, %v3179_v12  ;;  %v968_v53 = vpop.f32.mrb[59].mxu1 }
 0x15d   : > { %v813_v11 = vadd.f32 %v812_v63, %v3179_v12  ;;  %v814_v15 = vpop.f32.mrb[61].mxu0  ;;  %v969_v56 = vadd.f32 %v968_v53, %v3183_v13  ;;  %v972_v6 = vpop.f32.mrb[60].mxu1 }
 0x15e   : > { %v815_v18 = vadd.f32 %v814_v15, %v3183_v13  ;;  %v816_v19 = vpop.f32.mrb[62].mxu0  ;;  %1549 = vmatprep.mubr.bf16.mxu1 %v1138_v60  ;;  %v1103_v57 = vmax.f32 %v967_v51, 0.0  ;;  %v973_v9 = vadd.f32 %v972_v6, %v3179_v12 }
 0x15f   : > { %v817_v21 = vadd.f32 %v816_v19, %v3179_v12  ;;  %v818_v22 = vpop.f32.mrb[63].mxu0  ;;  %1550 = vmatmul.mubr.bf16.gmra.mrb[120].mxu1 %v1137_v55  ;;  %v1041_v30 = vmax.f32 %v813_v11, 0.0  ;;  %v1102_v55 = vmax.f32 %v965_v43, 0.0  ;;  %v1104_v58 = vmax.f32 %v969_v56, 0.0  ;;  %v974_v11 = vpop.f32.mrb[61].mxu1 }
 0x160   : > { %v819_v27 = vadd.f32 %v818_v22, %v3183_v13  ;;  %v1042_v38 = vmax.f32 %v815_v18, 0.0  ;;  %v3417_v60 = vpack.c.bf16 %v1103_v57, %v1101_v48  ;;  %v975_v15 = vadd.f32 %v974_v11, %v3183_v13  ;;  %v976_v17 = vpop.f32.mrb[62].mxu1 }
 0x161   : > { %v1043_v31 = vmax.f32 %v817_v21, 0.0  ;;  %v3420_v63 = vpack.c.bf16 %v1104_v58, %v1102_v55  ;;  %v1105_v18 = vmax.f32 %v973_v9, 0.0  ;;  %v977_v19 = vadd.f32 %v976_v17, %v3179_v12  ;;  %v978_v20 = vpop.f32.mrb[63].mxu1  ;;  %v1205_v12 = vld [vmem:[%s3810_s4] sm:$0x3] }
 0x162   : > { %v1044_v40 = vmax.f32 %v819_v27, 0.0  ;;  %v1106_v21 = vmax.f32 %v975_v15, 0.0  ;;  %v979_v22 = vadd.f32 %v978_v20, %v3183_v13  ;;  %v3456_v13 = vrot.slane %v1205_v12, %v353_v8 }
 0x163   : > { %v1139_v46 = vpack.c.bf16 %v1043_v31, %v1041_v30  ;;  %v1107_v27 = vmax.f32 %v977_v19, 0.0 }
 0x164   : > { %v1140_v54 = vpack.c.bf16 %v1044_v40, %v1042_v38  ;;  %v1108_v29 = vmax.f32 %v979_v22, 0.0 }
 0x166   : > { %1559 = vmatprep.mubr.bf16.mxu1 %v1140_v54  ;;  %v3430_v30 = vpack.c.bf16 %v1108_v29, %v1106_v21 }
 0x167   : > { %1560 = vmatmul.mubr.bf16.gmra.mrb[124].mxu1 %v1139_v46 }
 0x168   : > { %1569 = vmatprep.mubr.bf16.mxu1 %v3216_v3  ;;  %v3427_v3 = vpack.c.bf16 %v1107_v27, %v1105_v18 }
 0x16f   : > { %1570 = vmatmul.mubr.bf16.gmra.mrb[128].mxu1 %v3213_v0  ;;  %v3461_v0 = vrot.slane %v1205_v12, %v357_v10 }
 0x170   : > { %1579 = vmatprep.mubr.bf16.mxu1 %v3232_v37 }
 0x177   : > { %1580 = vmatmul.mubr.bf16.gmra.mrb[132].mxu1 %v3229_v35 }
 0x178   : > { %1589 = vmatprep.mubr.bf16.mxu1 %v3248_v5 }
 0x17f   : > { %1590 = vmatmul.mubr.bf16.gmra.mrb[136].mxu1 %v3245_v1 }
 0x180   : > { %1599 = vmatprep.mubr.bf16.mxu1 %v3264_v41 }
 0x187   : > { %1600 = vmatmul.mubr.bf16.gmra.mrb[140].mxu1 %v3261_v39 }
 0x188   : > { %1609 = vmatprep.mubr.bf16.mxu1 %v3280_v16 }
 0x18f   : > { %1610 = vmatmul.mubr.bf16.gmra.mrb[144].mxu1 %v3277_v14 }
 0x190   : > { %1619 = vmatprep.mubr.bf16.mxu1 %v3296_v49 }
 0x197   : > { %1620 = vmatmul.mubr.bf16.gmra.mrb[148].mxu1 %v3293_v47 }
 0x198   : > { %1629 = vmatprep.mubr.bf16.mxu1 %v3312_v26 }
 0x19f   : > { %1630 = vmatmul.mubr.bf16.gmra.mrb[152].mxu1 %v3309_v24 }
 0x1a0   : > { %1639 = vmatprep.mubr.bf16.mxu1 %v3328_v61 }
 0x1a7   : > { %1640 = vmatmul.mubr.bf16.gmra.mrb[156].mxu1 %v3325_v59 }
 0x1a8   : > { %1649 = vmatprep.mubr.bf16.mxu1 %v3344_v44 }
 0x1af   : > { %1650 = vmatmul.mubr.bf16.gmra.mrb[160].mxu1 %v3341_v42 }
 0x1b0   : > { %1659 = vmatprep.mubr.bf16.mxu1 %v3360_v25 }
 0x1b7   : > { %1660 = vmatmul.mubr.bf16.gmra.mrb[164].mxu1 %v3357_v23 }
 0x1b8   : > { %1669 = vmatprep.mubr.bf16.mxu1 %v3372_v4 }
 0x1bf   : > { %1670 = vmatmul.mubr.bf16.gmra.mrb[168].mxu1 %v3369_v62 }
 0x1c0   : > { %1679 = vmatprep.mubr.bf16.mxu1 %v3387_v52 }
 0x1c2   : > { %v1411_v35 = vpop.f32.mrb[64].mxu1 }
 0x1c3   : > { %v1412_v37 = vadd.f32 %v1411_v35, %v3456_v13  ;;  %v1413_v1 = vpop.f32.mrb[65].mxu1 }
 0x1c4   : > { %v1414_v5 = vadd.f32 %v1413_v1, %v3461_v0  ;;  %v1415_v39 = vpop.f32.mrb[66].mxu1 }
 0x1c5   : > { %v1416_v41 = vadd.f32 %v1415_v39, %v3456_v13  ;;  %v1417_v14 = vpop.f32.mrb[67].mxu1  ;;  %v1730_v8 = vmax.f32 %v1412_v37, 0.0 }
 0x1c6   : > { %v1418_v16 = vadd.f32 %v1417_v14, %v3461_v0  ;;  %v1731_v49 = vmax.f32 %v1414_v5, 0.0 }
 0x1c7   : > { %v1732_v47 = vmax.f32 %v1416_v41, 0.0  ;;  %1680 = vmatmul.mubr.bf16.gmra.mrb[172].mxu1 %v3384_v50 }
 0x1c8   : > { %v1733_v7 = vmax.f32 %v1418_v16, 0.0  ;;  %1689 = vmatprep.mubr.bf16.mxu1 %v3399_v36 }
 0x1c9   : > { %v1858_v10 = vpack.c.bf16 %v1732_v47, %v1730_v8 }
 0x1ca   : > { %v1859_v24 = vpack.c.bf16 %v1733_v7, %v1731_v49  ;;  %v1421_v26 = vpop.f32.mrb[68].mxu1 }
 0x1cb   : > { %v1422_v59 = vadd.f32 %v1421_v26, %v3456_v13  ;;  %v1423_v61 = vpop.f32.mrb[69].mxu1 }
 0x1cc   : > { %v1424_v42 = vadd.f32 %v1423_v61, %v3461_v0  ;;  %v1425_v44 = vpop.f32.mrb[70].mxu1  ;;  %2089 = vmatprep.mubr.bf16.mxu0 %v1859_v24 }
 0x1cd   : > { %v1426_v23 = vadd.f32 %v1425_v44, %v3456_v13  ;;  %v1427_v25 = vpop.f32.mrb[71].mxu1  ;;  %2090 = vmatmul.mubr.bf16.vlgmr.msra.gmra.mrb[64].mxu0 %v1858_v10  ;;  %v1734_v4 = vmax.f32 %v1422_v59, 0.0 }
 0x1ce   : > { %v1428_v62 = vadd.f32 %v1427_v25, %v3461_v0  ;;  %v1735_v52 = vmax.f32 %v1424_v42, 0.0 }
 0x1cf   : > { %v1736_v50 = vmax.f32 %v1426_v23, 0.0  ;;  %1690 = vmatmul.mubr.bf16.gmra.mrb[176].mxu1 %v3396_v33 }
 0x1d0   : > { %v1737_v36 = vmax.f32 %v1428_v62, 0.0  ;;  %1699 = vmatprep.mubr.bf16.mxu1 %v3411_v28 }
 0x1d1   : > { %v1860_v31 = vpack.c.bf16 %v1736_v50, %v1734_v4 }
 0x1d2   : > { %v1861_v32 = vpack.c.bf16 %v1737_v36, %v1735_v52  ;;  %v1431_v34 = vpop.f32.mrb[72].mxu1 }
 0x1d3   : > { %v1432_v38 = vadd.f32 %v1431_v34, %v3456_v13  ;;  %v1433_v40 = vpop.f32.mrb[73].mxu1 }
 0x1d4   : > { %v1434_v43 = vadd.f32 %v1433_v40, %v3461_v0  ;;  %v1435_v45 = vpop.f32.mrb[74].mxu1  ;;  %2097 = vmatprep.mubr.bf16.mxu0 %v1861_v32 }
 0x1d5   : > { %v1436_v46 = vadd.f32 %v1435_v45, %v3456_v13  ;;  %v1437_v48 = vpop.f32.mrb[75].mxu1  ;;  %2098 = vmatmul.mubr.bf16.gmra.mrb[68].mxu0 %v1860_v31  ;;  %v1738_v51 = vmax.f32 %v1432_v38, 0.0 }
 0x1d6   : > { %v1438_v33 = vadd.f32 %v1437_v48, %v3461_v0  ;;  %v1739_v28 = vmax.f32 %v1434_v43, 0.0 }
 0x1d7   : > { %v1740_v53 = vmax.f32 %v1436_v46, 0.0  ;;  %1700 = vmatmul.mubr.bf16.gmra.mrb[180].mxu1 %v3408_v2 }
 0x1d8   : > { %v1741_v54 = vmax.f32 %v1438_v33, 0.0  ;;  %1709 = vmatprep.mubr.bf16.mxu1 %v3420_v63 }
 0x1d9   : > { %v1862_v55 = vpack.c.bf16 %v1740_v53, %v1738_v51 }
 0x1da   : > { %v1863_v56 = vpack.c.bf16 %v1741_v54, %v1739_v28  ;;  %v1441_v57 = vpop.f32.mrb[76].mxu1 }
 0x1db   : > { %v1442_v58 = vadd.f32 %v1441_v57, %v3456_v13  ;;  %v1443_v6 = vpop.f32.mrb[77].mxu1 }
 0x1dc   : > { %v1444_v9 = vadd.f32 %v1443_v6, %v3461_v0  ;;  %v1445_v11 = vpop.f32.mrb[78].mxu1  ;;  %2105 = vmatprep.mubr.bf16.mxu0 %v1863_v56 }
 0x1dd   : > { %v1446_v15 = vadd.f32 %v1445_v11, %v3456_v13  ;;  %v1447_v17 = vpop.f32.mrb[79].mxu1  ;;  %2106 = vmatmul.mubr.bf16.gmra.mrb[72].mxu0 %v1862_v55  ;;  %v1742_v18 = vmax.f32 %v1442_v58, 0.0 }
 0x1de   : > { %v1448_v2 = vadd.f32 %v1447_v17, %v3461_v0  ;;  %v1743_v63 = vmax.f32 %v1444_v9, 0.0 }
 0x1df   : > { %v1744_v19 = vmax.f32 %v1446_v15, 0.0  ;;  %1710 = vmatmul.mubr.bf16.gmra.mrb[184].mxu1 %v3417_v60 }
 0x1e0   : > { %v1745_v20 = vmax.f32 %v1448_v2, 0.0  ;;  %1719 = vmatprep.mubr.bf16.mxu1 %v3430_v30 }
 0x1e1   : > { %v1864_v21 = vpack.c.bf16 %v1744_v19, %v1742_v18 }
 0x1e2   : > { %v1865_v22 = vpack.c.bf16 %v1745_v20, %v1743_v63  ;;  %v1451_v27 = vpop.f32.mrb[80].mxu1 }
 0x1e3   : > { %v1452_v29 = vadd.f32 %v1451_v27, %v3456_v13  ;;  %v1453_v12 = vpop.f32.mrb[81].mxu1 }
 0x1e4   : > { %v1454_v35 = vadd.f32 %v1453_v12, %v3461_v0  ;;  %v1455_v37 = vpop.f32.mrb[82].mxu1  ;;  %2113 = vmatprep.mubr.bf16.mxu0 %v1865_v22 }
 0x1e5   : > { %v1456_v1 = vadd.f32 %v1455_v37, %v3456_v13  ;;  %v1457_v5 = vpop.f32.mrb[83].mxu1  ;;  %2114 = vmatmul.mubr.bf16.gmra.mrb[76].mxu0 %v1864_v21  ;;  %v1746_v39 = vmax.f32 %v1452_v29, 0.0 }
 0x1e6   : > { %v1458_v60 = vadd.f32 %v1457_v5, %v3461_v0  ;;  %v1747_v30 = vmax.f32 %v1454_v35, 0.0 }
 0x1e7   : > { %v1748_v41 = vmax.f32 %v1456_v1, 0.0  ;;  %1720 = vmatmul.mubr.bf16.gmra.mrb[188].mxu1 %v3427_v3 }
 0x1e8   : > { %v1749_v14 = vmax.f32 %v1458_v60, 0.0 }
 0x1e9   : > { %v1866_v16 = vpack.c.bf16 %v1748_v41, %v1746_v39 }
 0x1ea   : > { %v1867_v8 = vpack.c.bf16 %v1749_v14, %v1747_v30  ;;  %v1461_v47 = vpop.f32.mrb[84].mxu1 }
 0x1eb   : > { %v1462_v49 = vadd.f32 %v1461_v47, %v3456_v13  ;;  %v1463_v7 = vpop.f32.mrb[85].mxu1 }
 0x1ec   : > { %v1464_v10 = vadd.f32 %v1463_v7, %v3461_v0  ;;  %v1465_v24 = vpop.f32.mrb[86].mxu1  ;;  %2121 = vmatprep.mubr.bf16.mxu0 %v1867_v8 }
 0x1ed   : > { %v1466_v26 = vadd.f32 %v1465_v24, %v3456_v13  ;;  %v1467_v59 = vpop.f32.mrb[87].mxu1  ;;  %2122 = vmatmul.mubr.bf16.gmra.mrb[80].mxu0 %v1866_v16  ;;  %v1750_v42 = vmax.f32 %v1462_v49, 0.0 }
 0x1ee   : > { %v1468_v61 = vadd.f32 %v1467_v59, %v3461_v0  ;;  %v1751_v44 = vmax.f32 %v1464_v10, 0.0 }
 0x1ef   : > { %v1752_v3 = vmax.f32 %v1466_v26, 0.0 }
 0x1f0   : > { %v1753_v23 = vmax.f32 %v1468_v61, 0.0 }
 0x1f1   : > { %v1868_v25 = vpack.c.bf16 %v1752_v3, %v1750_v42 }
 0x1f2   : > { %v1869_v62 = vpack.c.bf16 %v1753_v23, %v1751_v44  ;;  %v1471_v4 = vpop.f32.mrb[88].mxu1 }
 0x1f3   : > { %v1472_v50 = vadd.f32 %v1471_v4, %v3456_v13  ;;  %v1473_v52 = vpop.f32.mrb[89].mxu1 }
 0x1f4   : > { %v1474_v36 = vadd.f32 %v1473_v52, %v3461_v0  ;;  %v1475_v31 = vpop.f32.mrb[90].mxu1  ;;  %2129 = vmatprep.mubr.bf16.mxu0 %v1869_v62 }
 0x1f5   : > { %v1476_v32 = vadd.f32 %v1475_v31, %v3456_v13  ;;  %v1477_v34 = vpop.f32.mrb[91].mxu1  ;;  %2130 = vmatmul.mubr.bf16.gmra.mrb[84].mxu0 %v1868_v25  ;;  %v1754_v40 = vmax.f32 %v1472_v50, 0.0 }
 0x1f6   : > { %v1478_v38 = vadd.f32 %v1477_v34, %v3461_v0  ;;  %v1755_v45 = vmax.f32 %v1474_v36, 0.0 }
 0x1f7   : > { %v1756_v43 = vmax.f32 %v1476_v32, 0.0 }
 0x1f8   : > { %v1757_v46 = vmax.f32 %v1478_v38, 0.0 }
 0x1f9   : > { %v1870_v48 = vpack.c.bf16 %v1756_v43, %v1754_v40 }
 0x1fa   : > { %v1871_v33 = vpack.c.bf16 %v1757_v46, %v1755_v45  ;;  %v1481_v51 = vpop.f32.mrb[92].mxu1 }
 0x1fb   : > { %v1482_v53 = vadd.f32 %v1481_v51, %v3456_v13  ;;  %v1483_v28 = vpop.f32.mrb[93].mxu1 }
 0x1fc   : > { %v1484_v54 = vadd.f32 %v1483_v28, %v3461_v0  ;;  %v1485_v55 = vpop.f32.mrb[94].mxu1  ;;  %2137 = vmatprep.mubr.bf16.mxu0 %v1871_v33 }
 0x1fd   : > { %v1486_v56 = vadd.f32 %v1485_v55, %v3456_v13  ;;  %v1487_v57 = vpop.f32.mrb[95].mxu1  ;;  %2138 = vmatmul.mubr.bf16.gmra.mrb[88].mxu0 %v1870_v48  ;;  %v1758_v6 = vmax.f32 %v1482_v53, 0.0 }
 0x1fe   : > { %v1488_v58 = vadd.f32 %v1487_v57, %v3461_v0  ;;  %v1759_v11 = vmax.f32 %v1484_v54, 0.0 }
 0x1ff   : > { %v1760_v9 = vmax.f32 %v1486_v56, 0.0 }
 0x200   : > { %v1761_v15 = vmax.f32 %v1488_v58, 0.0 }
 0x201   : > { %v1872_v17 = vpack.c.bf16 %v1760_v9, %v1758_v6 }
 0x202   : > { %v1873_v2 = vpack.c.bf16 %v1761_v15, %v1759_v11  ;;  %v1491_v18 = vpop.f32.mrb[96].mxu1 }
 0x203   : > { %v1492_v19 = vadd.f32 %v1491_v18, %v3456_v13  ;;  %v1493_v63 = vpop.f32.mrb[97].mxu1 }
 0x204   : > { %v1494_v20 = vadd.f32 %v1493_v63, %v3461_v0  ;;  %v1495_v21 = vpop.f32.mrb[98].mxu1  ;;  %2145 = vmatprep.mubr.bf16.mxu0 %v1873_v2 }
 0x205   : > { %v1496_v22 = vadd.f32 %v1495_v21, %v3456_v13  ;;  %v1497_v27 = vpop.f32.mrb[99].mxu1  ;;  %2146 = vmatmul.mubr.bf16.gmra.mrb[92].mxu0 %v1872_v17  ;;  %v1762_v12 = vmax.f32 %v1492_v19, 0.0 }
 0x206   : > { %v1498_v29 = vadd.f32 %v1497_v27, %v3461_v0  ;;  %v1763_v37 = vmax.f32 %v1494_v20, 0.0 }
 0x207   : > { %v1764_v35 = vmax.f32 %v1496_v22, 0.0 }
 0x208   : > { %v1765_v1 = vmax.f32 %v1498_v29, 0.0 }
 0x209   : > { %v1874_v5 = vpack.c.bf16 %v1764_v35, %v1762_v12 }
 0x20a   : > { %v1875_v60 = vpack.c.bf16 %v1765_v1, %v1763_v37  ;;  %v1501_v39 = vpop.f32.mrb[100].mxu1 }
 0x20b   : > { %v1502_v41 = vadd.f32 %v1501_v39, %v3456_v13  ;;  %v1503_v30 = vpop.f32.mrb[101].mxu1 }
 0x20c   : > { %v1504_v14 = vadd.f32 %v1503_v30, %v3461_v0  ;;  %v1505_v16 = vpop.f32.mrb[102].mxu1  ;;  %2153 = vmatprep.mubr.bf16.mxu0 %v1875_v60 }
 0x20d   : > { %v1506_v8 = vadd.f32 %v1505_v16, %v3456_v13  ;;  %v1507_v47 = vpop.f32.mrb[103].mxu1  ;;  %2154 = vmatmul.mubr.bf16.gmra.mrb[96].mxu0 %v1874_v5  ;;  %v1766_v7 = vmax.f32 %v1502_v41, 0.0 }
 0x20e   : > { %v1508_v49 = vadd.f32 %v1507_v47, %v3461_v0  ;;  %v1767_v24 = vmax.f32 %v1504_v14, 0.0 }
 0x20f   : > { %v1768_v10 = vmax.f32 %v1506_v8, 0.0 }
 0x210   : > { %v1769_v26 = vmax.f32 %v1508_v49, 0.0 }
 0x211   : > { %v1876_v59 = vpack.c.bf16 %v1768_v10, %v1766_v7 }
 0x212   : > { %v1877_v61 = vpack.c.bf16 %v1769_v26, %v1767_v24  ;;  %v1511_v42 = vpop.f32.mrb[104].mxu1 }
 0x213   : > { %v1512_v3 = vadd.f32 %v1511_v42, %v3456_v13  ;;  %v1513_v44 = vpop.f32.mrb[105].mxu1 }
 0x214   : > { %v1514_v23 = vadd.f32 %v1513_v44, %v3461_v0  ;;  %v1515_v25 = vpop.f32.mrb[106].mxu1  ;;  %2161 = vmatprep.mubr.bf16.mxu0 %v1877_v61 }
 0x215   : > { %v1516_v62 = vadd.f32 %v1515_v25, %v3456_v13  ;;  %v1517_v4 = vpop.f32.mrb[107].mxu1  ;;  %2162 = vmatmul.mubr.bf16.gmra.mrb[100].mxu0 %v1876_v59  ;;  %v1770_v52 = vmax.f32 %v1512_v3, 0.0 }
 0x216   : > { %v1518_v50 = vadd.f32 %v1517_v4, %v3461_v0  ;;  %v1771_v31 = vmax.f32 %v1514_v23, 0.0 }
 0x217   : > { %v1772_v36 = vmax.f32 %v1516_v62, 0.0 }
 0x218   : > { %v1773_v32 = vmax.f32 %v1518_v50, 0.0 }
 0x219   : > { %v1878_v34 = vpack.c.bf16 %v1772_v36, %v1770_v52 }
 0x21a   : > { %v1879_v38 = vpack.c.bf16 %v1773_v32, %v1771_v31  ;;  %v1521_v40 = vpop.f32.mrb[108].mxu1 }
 0x21b   : > { %v1522_v43 = vadd.f32 %v1521_v40, %v3456_v13  ;;  %v1523_v45 = vpop.f32.mrb[109].mxu1 }
 0x21c   : > { %v1524_v46 = vadd.f32 %v1523_v45, %v3461_v0  ;;  %v1525_v48 = vpop.f32.mrb[110].mxu1  ;;  %2169 = vmatprep.mubr.bf16.mxu0 %v1879_v38 }
 0x21d   : > { %v1526_v33 = vadd.f32 %v1525_v48, %v3456_v13  ;;  %v1527_v51 = vpop.f32.mrb[111].mxu1  ;;  %2170 = vmatmul.mubr.bf16.gmra.mrb[104].mxu0 %v1878_v34  ;;  %v1774_v28 = vmax.f32 %v1522_v43, 0.0 }
 0x21e   : > { %v1528_v53 = vadd.f32 %v1527_v51, %v3461_v0  ;;  %v1775_v55 = vmax.f32 %v1524_v46, 0.0 }
 0x21f   : > { %v1776_v54 = vmax.f32 %v1526_v33, 0.0 }
 0x220   : > { %v1777_v56 = vmax.f32 %v1528_v53, 0.0 }
 0x221   : > { %v1880_v57 = vpack.c.bf16 %v1776_v54, %v1774_v28 }
 0x222   : > { %v1881_v58 = vpack.c.bf16 %v1777_v56, %v1775_v55  ;;  %v1531_v6 = vpop.f32.mrb[112].mxu1 }
 0x223   : > { %v1532_v9 = vadd.f32 %v1531_v6, %v3456_v13  ;;  %v1533_v11 = vpop.f32.mrb[113].mxu1 }
 0x224   : > { %v1534_v15 = vadd.f32 %v1533_v11, %v3461_v0  ;;  %v1535_v17 = vpop.f32.mrb[114].mxu1  ;;  %2177 = vmatprep.mubr.bf16.mxu0 %v1881_v58 }
 0x225   : > { %v1536_v2 = vadd.f32 %v1535_v17, %v3456_v13  ;;  %v1537_v18 = vpop.f32.mrb[115].mxu1  ;;  %2178 = vmatmul.mubr.bf16.gmra.mrb[108].mxu0 %v1880_v57  ;;  %v1778_v63 = vmax.f32 %v1532_v9, 0.0 }
 0x226   : > { %v1538_v19 = vadd.f32 %v1537_v18, %v3461_v0  ;;  %v1779_v21 = vmax.f32 %v1534_v15, 0.0 }
 0x227   : > { %v1780_v20 = vmax.f32 %v1536_v2, 0.0 }
 0x228   : > { %v1781_v22 = vmax.f32 %v1538_v19, 0.0 }
 0x229   : > { %v1882_v27 = vpack.c.bf16 %v1780_v20, %v1778_v63 }
 0x22a   : > { %v1883_v29 = vpack.c.bf16 %v1781_v22, %v1779_v21  ;;  %v1541_v12 = vpop.f32.mrb[116].mxu1 }
 0x22b   : > { %v1542_v35 = vadd.f32 %v1541_v12, %v3456_v13  ;;  %v1543_v37 = vpop.f32.mrb[117].mxu1 }
 0x22c   : > { %v1544_v1 = vadd.f32 %v1543_v37, %v3461_v0  ;;  %v1545_v5 = vpop.f32.mrb[118].mxu1  ;;  %2185 = vmatprep.mubr.bf16.mxu0 %v1883_v29 }
 0x22d   : > { %v1546_v60 = vadd.f32 %v1545_v5, %v3456_v13  ;;  %v1547_v39 = vpop.f32.mrb[119].mxu1  ;;  %2186 = vmatmul.mubr.bf16.gmra.mrb[112].mxu0 %v1882_v27  ;;  %v1782_v30 = vmax.f32 %v1542_v35, 0.0 }
 0x22e   : > { %v1548_v41 = vadd.f32 %v1547_v39, %v3461_v0  ;;  %v1783_v16 = vmax.f32 %v1544_v1, 0.0 }
 0x22f   : > { %v1784_v14 = vmax.f32 %v1546_v60, 0.0 }
 0x230   : > { %v1785_v8 = vmax.f32 %v1548_v41, 0.0 }
 0x231   : > { %v1884_v47 = vpack.c.bf16 %v1784_v14, %v1782_v30 }
 0x232   : > { %v1885_v49 = vpack.c.bf16 %v1785_v8, %v1783_v16  ;;  %v1551_v7 = vpop.f32.mrb[120].mxu1 }
 0x233   : > { %v1552_v10 = vadd.f32 %v1551_v7, %v3456_v13  ;;  %v1553_v24 = vpop.f32.mrb[121].mxu1 }
 0x234   : > { %v1554_v26 = vadd.f32 %v1553_v24, %v3461_v0  ;;  %v1555_v59 = vpop.f32.mrb[122].mxu1  ;;  %2193 = vmatprep.mubr.bf16.mxu0 %v1885_v49 }
 0x235   : > { %v1556_v61 = vadd.f32 %v1555_v59, %v3456_v13  ;;  %v1557_v42 = vpop.f32.mrb[123].mxu1  ;;  %2194 = vmatmul.mubr.bf16.gmra.mrb[116].mxu0 %v1884_v47  ;;  %v1786_v44 = vmax.f32 %v1552_v10, 0.0 }
 0x236   : > { %v1558_v3 = vadd.f32 %v1557_v42, %v3461_v0  ;;  %v1787_v25 = vmax.f32 %v1554_v26, 0.0 }
 0x237   : > { %v1788_v23 = vmax.f32 %v1556_v61, 0.0 }
 0x238   : > { %v1789_v62 = vmax.f32 %v1558_v3, 0.0 }
 0x239   : > { %v1886_v4 = vpack.c.bf16 %v1788_v23, %v1786_v44 }
 0x23a   : > { %v1887_v50 = vpack.c.bf16 %v1789_v62, %v1787_v25  ;;  %v1561_v52 = vpop.f32.mrb[124].mxu1 }
 0x23b   : > { %v1562_v36 = vadd.f32 %v1561_v52, %v3456_v13  ;;  %v1563_v31 = vpop.f32.mrb[125].mxu1 }
 0x23c   : > { %v1564_v32 = vadd.f32 %v1563_v31, %v3461_v0  ;;  %v1565_v34 = vpop.f32.mrb[126].mxu1  ;;  %2201 = vmatprep.mubr.bf16.mxu0 %v1887_v50 }
 0x23d   : > { %v1566_v38 = vadd.f32 %v1565_v34, %v3456_v13  ;;  %v1567_v40 = vpop.f32.mrb[127].mxu1  ;;  %2202 = vmatmul.mubr.bf16.gmra.mrb[120].mxu0 %v1886_v4  ;;  %v1790_v45 = vmax.f32 %v1562_v36, 0.0 }
 0x23e   : > { %v1568_v43 = vadd.f32 %v1567_v40, %v3461_v0  ;;  %v1791_v48 = vmax.f32 %v1564_v32, 0.0 }
 0x23f   : > { %v1792_v46 = vmax.f32 %v1566_v38, 0.0 }
 0x240   : > { %v1793_v33 = vmax.f32 %v1568_v43, 0.0 }
 0x241   : > { %v1888_v51 = vpack.c.bf16 %v1792_v46, %v1790_v45 }
 0x242   : > { %v1889_v53 = vpack.c.bf16 %v1793_v33, %v1791_v48  ;;  %v1571_v28 = vpop.f32.mrb[128].mxu1 }
 0x243   : > { %v1572_v54 = vadd.f32 %v1571_v28, %v3456_v13  ;;  %v1573_v55 = vpop.f32.mrb[129].mxu1 }
 0x244   : > { %v1574_v56 = vadd.f32 %v1573_v55, %v3461_v0  ;;  %v1575_v57 = vpop.f32.mrb[130].mxu1  ;;  %2209 = vmatprep.mubr.bf16.mxu0 %v1889_v53 }
 0x245   : > { %v1576_v58 = vadd.f32 %v1575_v57, %v3456_v13  ;;  %v1577_v6 = vpop.f32.mrb[131].mxu1  ;;  %2210 = vmatmul.mubr.bf16.gmra.mrb[124].mxu0 %v1888_v51  ;;  %v1794_v11 = vmax.f32 %v1572_v54, 0.0 }
 0x246   : > { %v1578_v9 = vadd.f32 %v1577_v6, %v3461_v0  ;;  %v1795_v17 = vmax.f32 %v1574_v56, 0.0 }
 0x247   : > { %v1796_v15 = vmax.f32 %v1576_v58, 0.0 }
 0x248   : > { %v1797_v2 = vmax.f32 %v1578_v9, 0.0 }
 0x249   : > { %v1890_v18 = vpack.c.bf16 %v1796_v15, %v1794_v11 }
 0x24a   : > { %v1891_v19 = vpack.c.bf16 %v1797_v2, %v1795_v17  ;;  %v1581_v63 = vpop.f32.mrb[132].mxu1 }
 0x24b   : > { %v1582_v20 = vadd.f32 %v1581_v63, %v3456_v13  ;;  %v1583_v21 = vpop.f32.mrb[133].mxu1 }
 0x24c   : > { %v1584_v22 = vadd.f32 %v1583_v21, %v3461_v0  ;;  %v1585_v27 = vpop.f32.mrb[134].mxu1  ;;  %2217 = vmatprep.mubr.bf16.mxu0 %v1891_v19 }
 0x24d   : > { %v1586_v29 = vadd.f32 %v1585_v27, %v3456_v13  ;;  %v1587_v12 = vpop.f32.mrb[135].mxu1  ;;  %2218 = vmatmul.mubr.bf16.gmra.mrb[128].mxu0 %v1890_v18  ;;  %v1798_v37 = vmax.f32 %v1582_v20, 0.0 }
 0x24e   : > { %v1588_v35 = vadd.f32 %v1587_v12, %v3461_v0  ;;  %v1799_v5 = vmax.f32 %v1584_v22, 0.0 }
 0x24f   : > { %v1800_v1 = vmax.f32 %v1586_v29, 0.0 }
 0x250   : > { %v1801_v60 = vmax.f32 %v1588_v35, 0.0 }
 0x251   : > { %v1892_v39 = vpack.c.bf16 %v1800_v1, %v1798_v37 }
 0x252   : > { %v1893_v41 = vpack.c.bf16 %v1801_v60, %v1799_v5  ;;  %v1591_v30 = vpop.f32.mrb[136].mxu1 }
 0x253   : > { %v1592_v14 = vadd.f32 %v1591_v30, %v3456_v13  ;;  %v1593_v16 = vpop.f32.mrb[137].mxu1 }
 0x254   : > { %v1594_v8 = vadd.f32 %v1593_v16, %v3461_v0  ;;  %v1595_v47 = vpop.f32.mrb[138].mxu1  ;;  %2225 = vmatprep.mubr.bf16.mxu0 %v1893_v41 }
 0x255   : > { %v1596_v49 = vadd.f32 %v1595_v47, %v3456_v13  ;;  %v1597_v7 = vpop.f32.mrb[139].mxu1  ;;  %2226 = vmatmul.mubr.bf16.gmra.mrb[132].mxu0 %v1892_v39  ;;  %v1802_v24 = vmax.f32 %v1592_v14, 0.0 }
 0x256   : > { %v1598_v10 = vadd.f32 %v1597_v7, %v3461_v0  ;;  %v1803_v59 = vmax.f32 %v1594_v8, 0.0 }
 0x257   : > { %v1804_v26 = vmax.f32 %v1596_v49, 0.0 }
 0x258   : > { %v1805_v61 = vmax.f32 %v1598_v10, 0.0 }
 0x259   : > { %v1894_v42 = vpack.c.bf16 %v1804_v26, %v1802_v24 }
 0x25a   : > { %v1895_v3 = vpack.c.bf16 %v1805_v61, %v1803_v59  ;;  %v1601_v44 = vpop.f32.mrb[140].mxu1 }
 0x25b   : > { %v1602_v23 = vadd.f32 %v1601_v44, %v3456_v13  ;;  %v1603_v25 = vpop.f32.mrb[141].mxu1 }
 0x25c   : > { %v1604_v62 = vadd.f32 %v1603_v25, %v3461_v0  ;;  %v1605_v4 = vpop.f32.mrb[142].mxu1  ;;  %2233 = vmatprep.mubr.bf16.mxu0 %v1895_v3 }
 0x25d   : > { %v1606_v50 = vadd.f32 %v1605_v4, %v3456_v13  ;;  %v1607_v52 = vpop.f32.mrb[143].mxu1  ;;  %2234 = vmatmul.mubr.bf16.gmra.mrb[136].mxu0 %v1894_v42  ;;  %v1806_v31 = vmax.f32 %v1602_v23, 0.0 }
 0x25e   : > { %v1608_v36 = vadd.f32 %v1607_v52, %v3461_v0  ;;  %v1807_v34 = vmax.f32 %v1604_v62, 0.0 }
 0x25f   : > { %v1808_v32 = vmax.f32 %v1606_v50, 0.0 }
 0x260   : > { %v1809_v38 = vmax.f32 %v1608_v36, 0.0 }
 0x261   : > { %v1896_v40 = vpack.c.bf16 %v1808_v32, %v1806_v31 }
 0x262   : > { %v1897_v43 = vpack.c.bf16 %v1809_v38, %v1807_v34  ;;  %v1611_v45 = vpop.f32.mrb[144].mxu1 }
 0x263   : > { %v1612_v46 = vadd.f32 %v1611_v45, %v3456_v13  ;;  %v1613_v48 = vpop.f32.mrb[145].mxu1 }
 0x264   : > { %v1614_v33 = vadd.f32 %v1613_v48, %v3461_v0  ;;  %v1615_v51 = vpop.f32.mrb[146].mxu1  ;;  %2241 = vmatprep.mubr.bf16.mxu0 %v1897_v43 }
 0x265   : > { %v1616_v53 = vadd.f32 %v1615_v51, %v3456_v13  ;;  %v1617_v28 = vpop.f32.mrb[147].mxu1  ;;  %2242 = vmatmul.mubr.bf16.gmra.mrb[140].mxu0 %v1896_v40  ;;  %v1810_v55 = vmax.f32 %v1612_v46, 0.0 }
 0x266   : > { %v1618_v54 = vadd.f32 %v1617_v28, %v3461_v0  ;;  %v1811_v57 = vmax.f32 %v1614_v33, 0.0 }
 0x267   : > { %v1812_v56 = vmax.f32 %v1616_v53, 0.0 }
 0x268   : > { %v1813_v58 = vmax.f32 %v1618_v54, 0.0 }
 0x269   : > { %v1898_v6 = vpack.c.bf16 %v1812_v56, %v1810_v55 }
 0x26a   : > { %v1899_v9 = vpack.c.bf16 %v1813_v58, %v1811_v57  ;;  %v1621_v11 = vpop.f32.mrb[148].mxu1 }
 0x26b   : > { %v1622_v15 = vadd.f32 %v1621_v11, %v3456_v13  ;;  %v1623_v17 = vpop.f32.mrb[149].mxu1 }
 0x26c   : > { %v1624_v2 = vadd.f32 %v1623_v17, %v3461_v0  ;;  %v1625_v18 = vpop.f32.mrb[150].mxu1  ;;  %2249 = vmatprep.mubr.bf16.mxu0 %v1899_v9 }
 0x26d   : > { %v1626_v19 = vadd.f32 %v1625_v18, %v3456_v13  ;;  %v1627_v63 = vpop.f32.mrb[151].mxu1  ;;  %2250 = vmatmul.mubr.bf16.gmra.mrb[144].mxu0 %v1898_v6  ;;  %v1814_v21 = vmax.f32 %v1622_v15, 0.0 }
 0x26e   : > { %v1628_v20 = vadd.f32 %v1627_v63, %v3461_v0  ;;  %v1815_v27 = vmax.f32 %v1624_v2, 0.0 }
 0x26f   : > { %v1816_v22 = vmax.f32 %v1626_v19, 0.0 }
 0x270   : > { %v1817_v29 = vmax.f32 %v1628_v20, 0.0 }
 0x271   : > { %v1900_v12 = vpack.c.bf16 %v1816_v22, %v1814_v21 }
 0x272   : > { %v1901_v35 = vpack.c.bf16 %v1817_v29, %v1815_v27  ;;  %v1631_v37 = vpop.f32.mrb[152].mxu1 }
 0x273   : > { %v1632_v1 = vadd.f32 %v1631_v37, %v3456_v13  ;;  %v1633_v5 = vpop.f32.mrb[153].mxu1 }
 0x274   : > { %v1634_v60 = vadd.f32 %v1633_v5, %v3461_v0  ;;  %v1635_v39 = vpop.f32.mrb[154].mxu1  ;;  %2257 = vmatprep.mubr.bf16.mxu0 %v1901_v35 }
 0x275   : > { %v1636_v41 = vadd.f32 %v1635_v39, %v3456_v13  ;;  %v1637_v30 = vpop.f32.mrb[155].mxu1  ;;  %2258 = vmatmul.mubr.bf16.gmra.mrb[148].mxu0 %v1900_v12  ;;  %v1818_v16 = vmax.f32 %v1632_v1, 0.0 }
 0x276   : > { %v1638_v14 = vadd.f32 %v1637_v30, %v3461_v0  ;;  %v1819_v47 = vmax.f32 %v1634_v60, 0.0 }
 0x277   : > { %v1820_v8 = vmax.f32 %v1636_v41, 0.0 }
 0x278   : > { %v1821_v49 = vmax.f32 %v1638_v14, 0.0 }
 0x279   : > { %v1902_v7 = vpack.c.bf16 %v1820_v8, %v1818_v16 }
 0x27a   : > { %v1903_v10 = vpack.c.bf16 %v1821_v49, %v1819_v47  ;;  %v1641_v24 = vpop.f32.mrb[156].mxu1 }
 0x27b   : > { %v1642_v26 = vadd.f32 %v1641_v24, %v3456_v13  ;;  %v1643_v59 = vpop.f32.mrb[157].mxu1 }
 0x27c   : > { %v1644_v61 = vadd.f32 %v1643_v59, %v3461_v0  ;;  %v1645_v42 = vpop.f32.mrb[158].mxu1  ;;  %2265 = vmatprep.mubr.bf16.mxu0 %v1903_v10  ;;  %v3587_v59 = vld [vmem:[%s3812_s6] ss:$0 sm:$0xff] }
 0x27d   : > { %v1646_v3 = vadd.f32 %v1645_v42, %v3456_v13  ;;  %v1647_v44 = vpop.f32.mrb[159].mxu1  ;;  %2266 = vmatmul.mubr.bf16.gmra.mrb[152].mxu0 %v1902_v7  ;;  %v1822_v25 = vmax.f32 %v1642_v26, 0.0 }
 0x27e   : > { %v1648_v23 = vadd.f32 %v1647_v44, %v3461_v0  ;;  %v1823_v4 = vmax.f32 %v1644_v61, 0.0 }
 0x27f   : > { %v1824_v62 = vmax.f32 %v1646_v3, 0.0 }
 0x280   : > { %v1825_v50 = vmax.f32 %v1648_v23, 0.0 }
 0x281   : > { %v1904_v52 = vpack.c.bf16 %v1824_v62, %v1822_v25 }
 0x282   : > { %v1905_v36 = vpack.c.bf16 %v1825_v50, %v1823_v4  ;;  %v1651_v31 = vpop.f32.mrb[160].mxu1 }
 0x283   : > { %v1652_v32 = vadd.f32 %v1651_v31, %v3456_v13  ;;  %v1653_v34 = vpop.f32.mrb[161].mxu1 }
 0x284   : > { %v1654_v38 = vadd.f32 %v1653_v34, %v3461_v0  ;;  %v1655_v40 = vpop.f32.mrb[162].mxu1  ;;  %2273 = vmatprep.mubr.bf16.mxu0 %v1905_v36 }
 0x285   : > { %v1656_v43 = vadd.f32 %v1655_v40, %v3456_v13  ;;  %v1657_v45 = vpop.f32.mrb[163].mxu1  ;;  %2274 = vmatmul.mubr.bf16.gmra.mrb[156].mxu0 %v1904_v52  ;;  %v1826_v48 = vmax.f32 %v1652_v32, 0.0 }
 0x286   : > { %v1658_v46 = vadd.f32 %v1657_v45, %v3461_v0  ;;  %v1827_v51 = vmax.f32 %v1654_v38, 0.0 }
 0x287   : > { %v1828_v33 = vmax.f32 %v1656_v43, 0.0 }
 0x288   : > { %v1829_v53 = vmax.f32 %v1658_v46, 0.0 }
 0x289   : > { %v1906_v28 = vpack.c.bf16 %v1828_v33, %v1826_v48 }
 0x28a   : > { %v1907_v54 = vpack.c.bf16 %v1829_v53, %v1827_v51  ;;  %v1661_v55 = vpop.f32.mrb[164].mxu1 }
 0x28b   : > { %v1662_v56 = vadd.f32 %v1661_v55, %v3456_v13  ;;  %v1663_v57 = vpop.f32.mrb[165].mxu1 }
 0x28c   : > { %v1664_v58 = vadd.f32 %v1663_v57, %v3461_v0  ;;  %v1665_v6 = vpop.f32.mrb[166].mxu1  ;;  %2281 = vmatprep.mubr.bf16.mxu0 %v1907_v54 }
 0x28d   : > { %v1666_v9 = vadd.f32 %v1665_v6, %v3456_v13  ;;  %v1667_v11 = vpop.f32.mrb[167].mxu1  ;;  %2282 = vmatmul.mubr.bf16.gmra.mrb[160].mxu0 %v1906_v28  ;;  %v1830_v17 = vmax.f32 %v1662_v56, 0.0 }
 0x28e   : > { %v1668_v15 = vadd.f32 %v1667_v11, %v3461_v0  ;;  %v1831_v18 = vmax.f32 %v1664_v58, 0.0 }
 0x28f   : > { %v1832_v2 = vmax.f32 %v1666_v9, 0.0 }
 0x290   : > { %v1833_v19 = vmax.f32 %v1668_v15, 0.0 }
 0x291   : > { %v1908_v63 = vpack.c.bf16 %v1832_v2, %v1830_v17 }
 0x292   : > { %v1909_v20 = vpack.c.bf16 %v1833_v19, %v1831_v18  ;;  %v1671_v21 = vpop.f32.mrb[168].mxu1 }
 0x293   : > { %v1672_v22 = vadd.f32 %v1671_v21, %v3456_v13  ;;  %v1673_v27 = vpop.f32.mrb[169].mxu1 }
 0x294   : > { %v1674_v29 = vadd.f32 %v1673_v27, %v3461_v0  ;;  %v1675_v12 = vpop.f32.mrb[170].mxu1  ;;  %2289 = vmatprep.mubr.bf16.mxu0 %v1909_v20 }
 0x295   : > { %v1676_v35 = vadd.f32 %v1675_v12, %v3456_v13  ;;  %v1677_v37 = vpop.f32.mrb[171].mxu1  ;;  %2290 = vmatmul.mubr.bf16.gmra.mrb[164].mxu0 %v1908_v63  ;;  %v1834_v5 = vmax.f32 %v1672_v22, 0.0 }
 0x296   : > { %v1678_v1 = vadd.f32 %v1677_v37, %v3461_v0  ;;  %v1835_v39 = vmax.f32 %v1674_v29, 0.0 }
 0x297   : > { %v1836_v60 = vmax.f32 %v1676_v35, 0.0 }
 0x298   : > { %v1837_v41 = vmax.f32 %v1678_v1, 0.0 }
 0x299   : > { %v1910_v30 = vpack.c.bf16 %v1836_v60, %v1834_v5 }
 0x29a   : > { %v1911_v14 = vpack.c.bf16 %v1837_v41, %v1835_v39  ;;  %v1681_v16 = vpop.f32.mrb[172].mxu1 }
 0x29b   : > { %v1682_v8 = vadd.f32 %v1681_v16, %v3456_v13  ;;  %v1683_v47 = vpop.f32.mrb[173].mxu1 }
 0x29c   : > { %v1684_v49 = vadd.f32 %v1683_v47, %v3461_v0  ;;  %v1685_v7 = vpop.f32.mrb[174].mxu1  ;;  %2297 = vmatprep.mubr.bf16.mxu0 %v1911_v14 }
 0x29d   : > { %v1686_v10 = vadd.f32 %v1685_v7, %v3456_v13  ;;  %v1687_v24 = vpop.f32.mrb[175].mxu1  ;;  %2298 = vmatmul.mubr.bf16.gmra.mrb[168].mxu0 %v1910_v30  ;;  %v1838_v61 = vmax.f32 %v1682_v8, 0.0 }
 0x29e   : > { %v1688_v26 = vadd.f32 %v1687_v24, %v3461_v0  ;;  %v1839_v3 = vmax.f32 %v1684_v49, 0.0 }
 0x29f   : > { %v1840_v42 = vmax.f32 %v1686_v10, 0.0 }
 0x2a0   : > { %v1841_v44 = vmax.f32 %v1688_v26, 0.0  ;;  %v2091_v23 = vpop.f32.mrb[64].mxu0 }
 0x2a1   : > { %v1912_v25 = vpack.c.bf16 %v1840_v42, %v1838_v61  ;;  %v2092_v62 = vadd.f32 %v3587_v59, %v2091_v23  ;;  %v2093_v4 = vpop.f32.mrb[65].mxu0 }
 0x2a2   : > { %v1913_v50 = vpack.c.bf16 %v1841_v44, %v1839_v3  ;;  %v1691_v52 = vpop.f32.mrb[176].mxu1  ;;  %v2094_v36 = vpop.f32.mrb[66].mxu0 }
 0x2a3   : > { %2767 = vtanh.f32 %v2092_v62  ;;  %v1692_v31 = vadd.f32 %v1691_v52, %v3456_v13  ;;  %v2095_v32 = vadd.f32 %v3587_v59, %v2094_v36  ;;  %v1693_v34 = vpop.f32.mrb[177].mxu1  ;;  %v2096_v38 = vpop.f32.mrb[67].mxu0 }
 0x2a4   : > { %v1694_v40 = vadd.f32 %v1693_v34, %v3461_v0  ;;  %v1695_v43 = vpop.f32.mrb[178].mxu1  ;;  %2305 = vmatprep.mubr.bf16.mxu0 %v1913_v50 }
 0x2a5   : > { %2769 = vtanh.f32 %v2095_v32  ;;  %v1696_v45 = vadd.f32 %v1695_v43, %v3456_v13  ;;  %v1697_v46 = vpop.f32.mrb[179].mxu1  ;;  %2306 = vmatmul.mubr.bf16.gmra.mrb[172].mxu0 %v1912_v25  ;;  %v1842_v33 = vmax.f32 %v1692_v31, 0.0 }
 0x2a6   : > { %v1698_v48 = vadd.f32 %v1697_v46, %v3461_v0  ;;  %v1843_v53 = vmax.f32 %v1694_v40, 0.0 }
 0x2a7   : > { %v1844_v51 = vmax.f32 %v1696_v45, 0.0 }
 0x2a8   : > { %v1845_v28 = vmax.f32 %v1698_v48, 0.0  ;;  %v2099_v54 = vpop.f32.mrb[68].mxu0 }
 0x2a9   : > { %v1914_v55 = vpack.c.bf16 %v1844_v51, %v1842_v33  ;;  %v2100_v56 = vadd.f32 %v3587_v59, %v2099_v54  ;;  %v2101_v57 = vpop.f32.mrb[69].mxu0 }
 0x2aa   : > { %v1915_v58 = vpack.c.bf16 %v1845_v28, %v1843_v53  ;;  %v1701_v6 = vpop.f32.mrb[180].mxu1  ;;  %v2102_v9 = vpop.f32.mrb[70].mxu0 }
 0x2ab   : > { %2771 = vtanh.f32 %v2100_v56  ;;  %v1702_v11 = vadd.f32 %v1701_v6, %v3456_v13  ;;  %v2103_v15 = vadd.f32 %v3587_v59, %v2102_v9  ;;  %v1703_v17 = vpop.f32.mrb[181].mxu1  ;;  %v2104_v2 = vpop.f32.mrb[71].mxu0 }
 0x2ac   : > { %v1704_v18 = vadd.f32 %v1703_v17, %v3461_v0  ;;  %v1705_v19 = vpop.f32.mrb[182].mxu1  ;;  %2313 = vmatprep.mubr.bf16.mxu0 %v1915_v58 }
 0x2ad   : > { %v2768_v63 = vpop.eup %2767  ;;  %2773 = vtanh.f32 %v2103_v15  ;;  %v1706_v20 = vadd.f32 %v1705_v19, %v3456_v13  ;;  %v1707_v21 = vpop.f32.mrb[183].mxu1  ;;  %2314 = vmatmul.mubr.bf16.gmra.mrb[176].mxu0 %v1914_v55  ;;  %v1846_v29 = vmax.f32 %v1702_v11, 0.0 }
 0x2ae   : > { %2411 = vst.msk [vmem:[%s3600_s15] sm:$0xff] %vm2410_vm1, %v2768_v63  ;;  %v1708_v22 = vadd.f32 %v1707_v21, %v3461_v0  ;;  %v1847_v35 = vmax.f32 %v1704_v18, 0.0 }
 0x2af   : > { %v2770_v27 = vpop.eup %2769  ;;  %v1848_v12 = vmax.f32 %v1706_v20, 0.0 }
 0x2b0   : > { %2412 = vst.msk [vmem:[%s3600_s15 + $0x8] sm:$0xff] %vm2410_vm1, %v2770_v27  ;;  %v1849_v37 = vmax.f32 %v1708_v22, 0.0  ;;  %v2107_v1 = vpop.f32.mrb[72].mxu0 }
 0x2b1   : > { %v1916_v5 = vpack.c.bf16 %v1848_v12, %v1846_v29  ;;  %v2108_v60 = vadd.f32 %v3587_v59, %v2107_v1  ;;  %v2109_v39 = vpop.f32.mrb[73].mxu0 }
 0x2b2   : > { %v1917_v41 = vpack.c.bf16 %v1849_v37, %v1847_v35  ;;  %v1711_v30 = vpop.f32.mrb[184].mxu1  ;;  %v2110_v14 = vpop.f32.mrb[74].mxu0 }
 0x2b3   : > { %2775 = vtanh.f32 %v2108_v60  ;;  %v1712_v16 = vadd.f32 %v1711_v30, %v3456_v13  ;;  %v2111_v8 = vadd.f32 %v3587_v59, %v2110_v14  ;;  %v1713_v47 = vpop.f32.mrb[185].mxu1  ;;  %v2112_v49 = vpop.f32.mrb[75].mxu0 }
 0x2b4   : > { %v1714_v7 = vadd.f32 %v1713_v47, %v3461_v0  ;;  %v1715_v10 = vpop.f32.mrb[186].mxu1  ;;  %2321 = vmatprep.mubr.bf16.mxu0 %v1917_v41 }
 0x2b5   : > { %v2772_v24 = vpop.eup %2771  ;;  %2777 = vtanh.f32 %v2111_v8  ;;  %v1716_v26 = vadd.f32 %v1715_v10, %v3456_v13  ;;  %v1717_v61 = vpop.f32.mrb[187].mxu1  ;;  %2322 = vmatmul.mubr.bf16.gmra.mrb[180].mxu0 %v1916_v5  ;;  %v1850_v44 = vmax.f32 %v1712_v16, 0.0 }
 0x2b6   : > { %2413 = vst.msk [vmem:[%s3600_s15 + $0x10] sm:$0xff] %vm2410_vm1, %v2772_v24  ;;  %v1718_v42 = vadd.f32 %v1717_v61, %v3461_v0  ;;  %v1851_v25 = vmax.f32 %v1714_v7, 0.0 }
 0x2b7   : > { %v2774_v3 = vpop.eup %2773  ;;  %v1852_v23 = vmax.f32 %v1716_v26, 0.0 }
 0x2b8   : > { %2414 = vst.msk [vmem:[%s3600_s15 + $0x18] sm:$0xff] %vm2410_vm1, %v2774_v3  ;;  %v1853_v62 = vmax.f32 %v1718_v42, 0.0  ;;  %v2115_v4 = vpop.f32.mrb[76].mxu0 }
 0x2b9   : > { %v1918_v50 = vpack.c.bf16 %v1852_v23, %v1850_v44  ;;  %v2116_v52 = vadd.f32 %v3587_v59, %v2115_v4  ;;  %v2117_v36 = vpop.f32.mrb[77].mxu0 }
 0x2ba   : > { %v1919_v31 = vpack.c.bf16 %v1853_v62, %v1851_v25  ;;  %v1721_v32 = vpop.f32.mrb[188].mxu1  ;;  %v2118_v34 = vpop.f32.mrb[78].mxu0 }
 0x2bb   : > { %2779 = vtanh.f32 %v2116_v52  ;;  %v1722_v38 = vadd.f32 %v1721_v32, %v3456_v13  ;;  %v2119_v40 = vadd.f32 %v3587_v59, %v2118_v34  ;;  %v1723_v43 = vpop.f32.mrb[189].mxu1  ;;  %v2120_v45 = vpop.f32.mrb[79].mxu0 }
 0x2bc   : > { %v1724_v46 = vadd.f32 %v1723_v43, %v3461_v0  ;;  %v1725_v48 = vpop.f32.mrb[190].mxu1  ;;  %2329 = vmatprep.mubr.bf16.mxu0 %v1919_v31 }
 0x2bd   : > { %v2776_v33 = vpop.eup %2775  ;;  %2781 = vtanh.f32 %v2119_v40  ;;  %v1726_v51 = vadd.f32 %v1725_v48, %v3456_v13  ;;  %v1727_v53 = vpop.f32.mrb[191].mxu1  ;;  %2330 = vmatmul.mubr.bf16.gmra.mrb[184].mxu0 %v1918_v50  ;;  %v1854_v55 = vmax.f32 %v1722_v38, 0.0 }
 0x2be   : > { %2415 = vst.msk [vmem:[%s3600_s15 + $0x20] sm:$0xff] %vm2410_vm1, %v2776_v33  ;;  %v1728_v28 = vadd.f32 %v1727_v53, %v3461_v0  ;;  %v1855_v57 = vmax.f32 %v1724_v46, 0.0 }
 0x2bf   : > { %v2778_v54 = vpop.eup %2777  ;;  %v1856_v56 = vmax.f32 %v1726_v51, 0.0 }
 0x2c0   : > { %2416 = vst.msk [vmem:[%s3600_s15 + $0x28] sm:$0xff] %vm2410_vm1, %v2778_v54  ;;  %v1857_v58 = vmax.f32 %v1728_v28, 0.0  ;;  %v2123_v6 = vpop.f32.mrb[80].mxu0 }
 0x2c1   : > { %v1920_v9 = vpack.c.bf16 %v1856_v56, %v1854_v55  ;;  %v2124_v11 = vadd.f32 %v3587_v59, %v2123_v6  ;;  %v2125_v13 = vpop.f32.mrb[81].mxu0 }
 0x2c2   : > { %v1921_v15 = vpack.c.bf16 %v1857_v58, %v1855_v57  ;;  %v2126_v17 = vpop.f32.mrb[82].mxu0 }
 0x2c3   : > { %2783 = vtanh.f32 %v2124_v11  ;;  %v2127_v2 = vadd.f32 %v3587_v59, %v2126_v17  ;;  %v2128_v0 = vpop.f32.mrb[83].mxu0 }
 0x2c4   : > { %2337 = vmatprep.mubr.bf16.mxu0 %v1921_v15 }
 0x2c5   : > { %v2780_v18 = vpop.eup %2779  ;;  %2785 = vtanh.f32 %v2127_v2  ;;  %2338 = vmatmul.mubr.bf16.gmra.mrb[188].mxu0 %v1920_v9 }
 0x2c6   : > { %2417 = vst.msk [vmem:[%s3600_s15 + $0x30] sm:$0xff] %vm2410_vm1, %v2780_v18 }
 0x2c7   : > { %v2782_v19 = vpop.eup %2781 }
 0x2c8   : > { %2418 = vst.msk [vmem:[%s3600_s15 + $0x38] sm:$0xff] %vm2410_vm1, %v2782_v19  ;;  %v2131_v63 = vpop.f32.mrb[84].mxu0 }
 0x2c9   : > { %v2132_v20 = vadd.f32 %v3587_v59, %v2131_v63  ;;  %v2133_v21 = vpop.f32.mrb[85].mxu0 }
 0x2ca   : > { %v2134_v22 = vpop.f32.mrb[86].mxu0 }
 0x2cb   : > { %2787 = vtanh.f32 %v2132_v20  ;;  %v2135_v27 = vadd.f32 %v3587_v59, %v2134_v22  ;;  %v2136_v29 = vpop.f32.mrb[87].mxu0 }
 0x2cd   : > { %v2784_v12 = vpop.eup %2783  ;;  %2789 = vtanh.f32 %v2135_v27 }
 0x2ce   : > { %2419 = vst.msk [vmem:[%s3600_s15 + $0x40] sm:$0xff] %vm2410_vm1, %v2784_v12 }
 0x2cf   : > { %v2786_v35 = vpop.eup %2785 }
 0x2d0   : > { %2420 = vst.msk [vmem:[%s3600_s15 + $0x48] sm:$0xff] %vm2410_vm1, %v2786_v35  ;;  %v2139_v37 = vpop.f32.mrb[88].mxu0 }
 0x2d1   : > { %v2140_v1 = vadd.f32 %v3587_v59, %v2139_v37  ;;  %v2141_v5 = vpop.f32.mrb[89].mxu0 }
 0x2d2   : > { %v2142_v60 = vpop.f32.mrb[90].mxu0 }
 0x2d3   : > { %2791 = vtanh.f32 %v2140_v1  ;;  %v2143_v39 = vadd.f32 %v3587_v59, %v2142_v60  ;;  %v2144_v41 = vpop.f32.mrb[91].mxu0 }
 0x2d5   : > { %v2788_v30 = vpop.eup %2787  ;;  %2793 = vtanh.f32 %v2143_v39 }
 0x2d6   : > { %2421 = vst.msk [vmem:[%s3600_s15 + $0x50] sm:$0xff] %vm2410_vm1, %v2788_v30 }
 0x2d7   : > { %v2790_v14 = vpop.eup %2789 }
 0x2d8   : > { %2422 = vst.msk [vmem:[%s3600_s15 + $0x58] sm:$0xff] %vm2410_vm1, %v2790_v14  ;;  %v2147_v16 = vpop.f32.mrb[92].mxu0 }
 0x2d9   : > { %v2148_v8 = vadd.f32 %v3587_v59, %v2147_v16  ;;  %v2149_v47 = vpop.f32.mrb[93].mxu0 }
 0x2da   : > { %v2150_v49 = vpop.f32.mrb[94].mxu0 }
 0x2db   : > { %2795 = vtanh.f32 %v2148_v8  ;;  %v2151_v7 = vadd.f32 %v3587_v59, %v2150_v49  ;;  %v2152_v10 = vpop.f32.mrb[95].mxu0 }
 0x2dd   : > { %v2792_v24 = vpop.eup %2791  ;;  %2797 = vtanh.f32 %v2151_v7 }
 0x2de   : > { %2423 = vst.msk [vmem:[%s3600_s15 + $0x60] sm:$0xff] %vm2410_vm1, %v2792_v24 }
 0x2df   : > { %v2794_v26 = vpop.eup %2793 }
 0x2e0   : > { %2424 = vst.msk [vmem:[%s3600_s15 + $0x68] sm:$0xff] %vm2410_vm1, %v2794_v26  ;;  %v2155_v61 = vpop.f32.mrb[96].mxu0 }
 0x2e1   : > { %v2156_v42 = vadd.f32 %v3587_v59, %v2155_v61  ;;  %v2157_v3 = vpop.f32.mrb[97].mxu0 }
 0x2e2   : > { %v2158_v44 = vpop.f32.mrb[98].mxu0 }
 0x2e3   : > { %2799 = vtanh.f32 %v2156_v42  ;;  %v2159_v23 = vadd.f32 %v3587_v59, %v2158_v44  ;;  %v2160_v25 = vpop.f32.mrb[99].mxu0 }
 0x2e5   : > { %v2796_v62 = vpop.eup %2795  ;;  %2801 = vtanh.f32 %v2159_v23 }
 0x2e6   : > { %2425 = vst.msk [vmem:[%s3600_s15 + $0x70] sm:$0xff] %vm2410_vm1, %v2796_v62 }
 0x2e7   : > { %v2798_v4 = vpop.eup %2797 }
 0x2e8   : > { %2426 = vst.msk [vmem:[%s3600_s15 + $0x78] sm:$0xff] %vm2410_vm1, %v2798_v4  ;;  %v2163_v50 = vpop.f32.mrb[100].mxu0 }
 0x2e9   : > { %v2164_v52 = vadd.f32 %v3587_v59, %v2163_v50  ;;  %v2165_v36 = vpop.f32.mrb[101].mxu0 }
 0x2ea   : > { %v2166_v31 = vpop.f32.mrb[102].mxu0 }
 0x2eb   : > { %2803 = vtanh.f32 %v2164_v52  ;;  %v2167_v32 = vadd.f32 %v3587_v59, %v2166_v31  ;;  %v2168_v34 = vpop.f32.mrb[103].mxu0 }
 0x2ed   : > { %v2800_v38 = vpop.eup %2799  ;;  %2805 = vtanh.f32 %v2167_v32 }
 0x2ee   : > { %2427 = vst.msk [vmem:[%s3600_s15 + $0x80] sm:$0xff] %vm2410_vm1, %v2800_v38 }
 0x2ef   : > { %v2802_v40 = vpop.eup %2801 }
 0x2f0   : > { %2428 = vst.msk [vmem:[%s3600_s15 + $0x88] sm:$0xff] %vm2410_vm1, %v2802_v40  ;;  %v2171_v43 = vpop.f32.mrb[104].mxu0 }
 0x2f1   : > { %v2172_v45 = vadd.f32 %v3587_v59, %v2171_v43  ;;  %v2173_v46 = vpop.f32.mrb[105].mxu0 }
 0x2f2   : > { %v2174_v48 = vpop.f32.mrb[106].mxu0 }
 0x2f3   : > { %2807 = vtanh.f32 %v2172_v45  ;;  %v2175_v33 = vadd.f32 %v3587_v59, %v2174_v48  ;;  %v2176_v51 = vpop.f32.mrb[107].mxu0 }
 0x2f5   : > { %v2804_v53 = vpop.eup %2803  ;;  %2809 = vtanh.f32 %v2175_v33 }
 0x2f6   : > { %2429 = vst.msk [vmem:[%s3600_s15 + $0x90] sm:$0xff] %vm2410_vm1, %v2804_v53 }
 0x2f7   : > { %v2806_v28 = vpop.eup %2805 }
 0x2f8   : > { %2430 = vst.msk [vmem:[%s3600_s15 + $0x98] sm:$0xff] %vm2410_vm1, %v2806_v28  ;;  %v2179_v54 = vpop.f32.mrb[108].mxu0 }
 0x2f9   : > { %v2180_v55 = vadd.f32 %v3587_v59, %v2179_v54  ;;  %v2181_v56 = vpop.f32.mrb[109].mxu0 }
 0x2fa   : > { %v2182_v57 = vpop.f32.mrb[110].mxu0 }
 0x2fb   : > { %2811 = vtanh.f32 %v2180_v55  ;;  %v2183_v58 = vadd.f32 %v3587_v59, %v2182_v57  ;;  %v2184_v6 = vpop.f32.mrb[111].mxu0 }
 0x2fd   : > { %v2808_v9 = vpop.eup %2807  ;;  %2813 = vtanh.f32 %v2183_v58 }
 0x2fe   : > { %2431 = vst.msk [vmem:[%s3600_s15 + $0xa0] sm:$0xff] %vm2410_vm1, %v2808_v9 }
 0x2ff   : > { %v2810_v11 = vpop.eup %2809 }
 0x300   : > { %2432 = vst.msk [vmem:[%s3600_s15 + $0xa8] sm:$0xff] %vm2410_vm1, %v2810_v11  ;;  %v2187_v13 = vpop.f32.mrb[112].mxu0 }
 0x301   : > { %v2188_v15 = vadd.f32 %v3587_v59, %v2187_v13  ;;  %v2189_v17 = vpop.f32.mrb[113].mxu0 }
 0x302   : > { %v2190_v2 = vpop.f32.mrb[114].mxu0 }
 0x303   : > { %2815 = vtanh.f32 %v2188_v15  ;;  %v2191_v0 = vadd.f32 %v3587_v59, %v2190_v2  ;;  %v2192_v18 = vpop.f32.mrb[115].mxu0 }
 0x305   : > { %v2812_v19 = vpop.eup %2811  ;;  %2817 = vtanh.f32 %v2191_v0 }
 0x306   : > { %2433 = vst.msk [vmem:[%s3600_s15 + $0xb0] sm:$0xff] %vm2410_vm1, %v2812_v19 }
 0x307   : > { %v2814_v63 = vpop.eup %2813 }
 0x308   : > { %2434 = vst.msk [vmem:[%s3600_s15 + $0xb8] sm:$0xff] %vm2410_vm1, %v2814_v63  ;;  %v2195_v20 = vpop.f32.mrb[116].mxu0 }
 0x309   : > { %v2196_v21 = vadd.f32 %v3587_v59, %v2195_v20  ;;  %v2197_v22 = vpop.f32.mrb[117].mxu0 }
 0x30a   : > { %v2198_v27 = vpop.f32.mrb[118].mxu0 }
 0x30b   : > { %2819 = vtanh.f32 %v2196_v21  ;;  %v2199_v29 = vadd.f32 %v3587_v59, %v2198_v27  ;;  %v2200_v12 = vpop.f32.mrb[119].mxu0 }
 0x30d   : > { %v2816_v35 = vpop.eup %2815  ;;  %2821 = vtanh.f32 %v2199_v29 }
 0x30e   : > { %2435 = vst.msk [vmem:[%s3600_s15 + $0xc0] sm:$0xff] %vm2410_vm1, %v2816_v35 }
 0x30f   : > { %v2818_v37 = vpop.eup %2817 }
 0x310   : > { %2436 = vst.msk [vmem:[%s3600_s15 + $0xc8] sm:$0xff] %vm2410_vm1, %v2818_v37  ;;  %v2203_v1 = vpop.f32.mrb[120].mxu0 }
 0x311   : > { %v2204_v5 = vadd.f32 %v3587_v59, %v2203_v1  ;;  %v2205_v60 = vpop.f32.mrb[121].mxu0 }
 0x312   : > { %v2206_v39 = vpop.f32.mrb[122].mxu0 }
 0x313   : > { %2823 = vtanh.f32 %v2204_v5  ;;  %v2207_v41 = vadd.f32 %v3587_v59, %v2206_v39  ;;  %v2208_v30 = vpop.f32.mrb[123].mxu0 }
 0x315   : > { %v2820_v14 = vpop.eup %2819  ;;  %2825 = vtanh.f32 %v2207_v41 }
 0x316   : > { %2437 = vst.msk [vmem:[%s3600_s15 + $0xd0] sm:$0xff] %vm2410_vm1, %v2820_v14 }
 0x317   : > { %v2822_v16 = vpop.eup %2821 }
 0x318   : > { %2438 = vst.msk [vmem:[%s3600_s15 + $0xd8] sm:$0xff] %vm2410_vm1, %v2822_v16  ;;  %v2211_v8 = vpop.f32.mrb[124].mxu0 }
 0x319   : > { %v2212_v47 = vadd.f32 %v3587_v59, %v2211_v8  ;;  %v2213_v49 = vpop.f32.mrb[125].mxu0 }
 0x31a   : > { %v2214_v7 = vpop.f32.mrb[126].mxu0 }
 0x31b   : > { %2827 = vtanh.f32 %v2212_v47  ;;  %v2215_v10 = vadd.f32 %v3587_v59, %v2214_v7  ;;  %v2216_v24 = vpop.f32.mrb[127].mxu0 }
 0x31d   : > { %v2824_v26 = vpop.eup %2823  ;;  %2829 = vtanh.f32 %v2215_v10 }
 0x31e   : > { %2439 = vst.msk [vmem:[%s3600_s15 + $0xe0] sm:$0xff] %vm2410_vm1, %v2824_v26 }
 0x31f   : > { %v2826_v61 = vpop.eup %2825 }
 0x320   : > { %2440 = vst.msk [vmem:[%s3600_s15 + $0xe8] sm:$0xff] %vm2410_vm1, %v2826_v61  ;;  %v2219_v42 = vpop.f32.mrb[128].mxu0 }
 0x321   : > { %v2220_v3 = vadd.f32 %v3587_v59, %v2219_v42  ;;  %v2221_v44 = vpop.f32.mrb[129].mxu0 }
 0x322   : > { %v2222_v23 = vpop.f32.mrb[130].mxu0 }
 0x323   : > { %2831 = vtanh.f32 %v2220_v3  ;;  %v2223_v25 = vadd.f32 %v3587_v59, %v2222_v23  ;;  %v2224_v62 = vpop.f32.mrb[131].mxu0 }
 0x325   : > { %v2828_v4 = vpop.eup %2827  ;;  %2833 = vtanh.f32 %v2223_v25 }
 0x326   : > { %2441 = vst.msk [vmem:[%s3600_s15 + $0xf0] sm:$0xff] %vm2410_vm1, %v2828_v4 }
 0x327   : > { %v2830_v50 = vpop.eup %2829 }
 0x328   : > { %2442 = vst.msk [vmem:[%s3600_s15 + $0xf8] sm:$0xff] %vm2410_vm1, %v2830_v50  ;;  %v2227_v52 = vpop.f32.mrb[132].mxu0 }
 0x329   : > { %v2228_v36 = vadd.f32 %v3587_v59, %v2227_v52  ;;  %v2229_v31 = vpop.f32.mrb[133].mxu0 }
 0x32a   : > { %v2230_v32 = vpop.f32.mrb[134].mxu0 }
 0x32b   : > { %2835 = vtanh.f32 %v2228_v36  ;;  %v2231_v34 = vadd.f32 %v3587_v59, %v2230_v32  ;;  %v2232_v38 = vpop.f32.mrb[135].mxu0 }
 0x32d   : > { %v2832_v40 = vpop.eup %2831  ;;  %2837 = vtanh.f32 %v2231_v34 }
 0x32e   : > { %2443 = vst.msk [vmem:[%s3600_s15 + $0x100] sm:$0xff] %vm2410_vm1, %v2832_v40 }
 0x32f   : > { %v2834_v43 = vpop.eup %2833 }
 0x330   : > { %2444 = vst.msk [vmem:[%s3600_s15 + $0x108] sm:$0xff] %vm2410_vm1, %v2834_v43  ;;  %v2235_v45 = vpop.f32.mrb[136].mxu0 }
 0x331   : > { %v2236_v46 = vadd.f32 %v3587_v59, %v2235_v45  ;;  %v2237_v48 = vpop.f32.mrb[137].mxu0 }
 0x332   : > { %v2238_v33 = vpop.f32.mrb[138].mxu0 }
 0x333   : > { %2839 = vtanh.f32 %v2236_v46  ;;  %v2239_v51 = vadd.f32 %v3587_v59, %v2238_v33  ;;  %v2240_v53 = vpop.f32.mrb[139].mxu0 }
 0x335   : > { %v2836_v28 = vpop.eup %2835  ;;  %2841 = vtanh.f32 %v2239_v51 }
 0x336   : > { %2445 = vst.msk [vmem:[%s3600_s15 + $0x110] sm:$0xff] %vm2410_vm1, %v2836_v28 }
 0x337   : > { %v2838_v54 = vpop.eup %2837 }
 0x338   : > { %2446 = vst.msk [vmem:[%s3600_s15 + $0x118] sm:$0xff] %vm2410_vm1, %v2838_v54  ;;  %v2243_v55 = vpop.f32.mrb[140].mxu0 }
 0x339   : > { %v2244_v56 = vadd.f32 %v3587_v59, %v2243_v55  ;;  %v2245_v57 = vpop.f32.mrb[141].mxu0 }
 0x33a   : > { %v2246_v58 = vpop.f32.mrb[142].mxu0 }
 0x33b   : > { %2843 = vtanh.f32 %v2244_v56  ;;  %v2247_v6 = vadd.f32 %v3587_v59, %v2246_v58  ;;  %v2248_v9 = vpop.f32.mrb[143].mxu0 }
 0x33d   : > { %v2840_v11 = vpop.eup %2839  ;;  %2845 = vtanh.f32 %v2247_v6 }
 0x33e   : > { %2447 = vst.msk [vmem:[%s3600_s15 + $0x120] sm:$0xff] %vm2410_vm1, %v2840_v11 }
 0x33f   : > { %v2842_v13 = vpop.eup %2841 }
 0x340   : > { %2448 = vst.msk [vmem:[%s3600_s15 + $0x128] sm:$0xff] %vm2410_vm1, %v2842_v13  ;;  %v2251_v15 = vpop.f32.mrb[144].mxu0 }
 0x341   : > { %v2252_v17 = vadd.f32 %v3587_v59, %v2251_v15  ;;  %v2253_v2 = vpop.f32.mrb[145].mxu0 }
 0x342   : > { %v2254_v0 = vpop.f32.mrb[146].mxu0 }
 0x343   : > { %2847 = vtanh.f32 %v2252_v17  ;;  %v2255_v18 = vadd.f32 %v3587_v59, %v2254_v0  ;;  %v2256_v19 = vpop.f32.mrb[147].mxu0 }
 0x345   : > { %v2844_v63 = vpop.eup %2843  ;;  %2849 = vtanh.f32 %v2255_v18 }
 0x346   : > { %2449 = vst.msk [vmem:[%s3600_s15 + $0x130] sm:$0xff] %vm2410_vm1, %v2844_v63 }
 0x347   : > { %v2846_v20 = vpop.eup %2845 }
 0x348   : > { %2450 = vst.msk [vmem:[%s3600_s15 + $0x138] sm:$0xff] %vm2410_vm1, %v2846_v20  ;;  %v2259_v21 = vpop.f32.mrb[148].mxu0 }
 0x349   : > { %v2260_v22 = vadd.f32 %v3587_v59, %v2259_v21  ;;  %v2261_v27 = vpop.f32.mrb[149].mxu0 }
 0x34a   : > { %v2262_v29 = vpop.f32.mrb[150].mxu0 }
 0x34b   : > { %2851 = vtanh.f32 %v2260_v22  ;;  %v2263_v12 = vadd.f32 %v3587_v59, %v2262_v29  ;;  %v2264_v35 = vpop.f32.mrb[151].mxu0 }
 0x34d   : > { %v2848_v37 = vpop.eup %2847  ;;  %2853 = vtanh.f32 %v2263_v12 }
 0x34e   : > { %2451 = vst.msk [vmem:[%s3600_s15 + $0x140] sm:$0xff] %vm2410_vm1, %v2848_v37 }
 0x34f   : > { %v2850_v1 = vpop.eup %2849 }
 0x350   : > { %2452 = vst.msk [vmem:[%s3600_s15 + $0x148] sm:$0xff] %vm2410_vm1, %v2850_v1  ;;  %v2267_v5 = vpop.f32.mrb[152].mxu0 }
 0x351   : > { %v2268_v60 = vadd.f32 %v3587_v59, %v2267_v5  ;;  %v2269_v39 = vpop.f32.mrb[153].mxu0 }
 0x352   : > { %v2270_v41 = vpop.f32.mrb[154].mxu0 }
 0x353   : > { %2855 = vtanh.f32 %v2268_v60  ;;  %v2271_v30 = vadd.f32 %v3587_v59, %v2270_v41  ;;  %v2272_v14 = vpop.f32.mrb[155].mxu0 }
 0x355   : > { %v2852_v16 = vpop.eup %2851  ;;  %2857 = vtanh.f32 %v2271_v30 }
 0x356   : > { %2453 = vst.msk [vmem:[%s3600_s15 + $0x150] sm:$0xff] %vm2410_vm1, %v2852_v16 }
 0x357   : > { %v2854_v8 = vpop.eup %2853 }
 0x358   : > { %2454 = vst.msk [vmem:[%s3600_s15 + $0x158] sm:$0xff] %vm2410_vm1, %v2854_v8  ;;  %v2275_v47 = vpop.f32.mrb[156].mxu0 }
 0x359   : > { %v2276_v49 = vadd.f32 %v3587_v59, %v2275_v47  ;;  %v2277_v7 = vpop.f32.mrb[157].mxu0 }
 0x35a   : > { %v2278_v10 = vpop.f32.mrb[158].mxu0 }
 0x35b   : > { %2859 = vtanh.f32 %v2276_v49  ;;  %v2279_v24 = vadd.f32 %v3587_v59, %v2278_v10  ;;  %v2280_v26 = vpop.f32.mrb[159].mxu0 }
 0x35d   : > { %v2856_v61 = vpop.eup %2855  ;;  %2861 = vtanh.f32 %v2279_v24 }
 0x35e   : > { %2455 = vst.msk [vmem:[%s3600_s15 + $0x160] sm:$0xff] %vm2410_vm1, %v2856_v61 }
 0x35f   : > { %v2858_v42 = vpop.eup %2857 }
 0x360   : > { %2456 = vst.msk [vmem:[%s3600_s15 + $0x168] sm:$0xff] %vm2410_vm1, %v2858_v42  ;;  %v2283_v3 = vpop.f32.mrb[160].mxu0 }
 0x361   : > { %v2284_v44 = vadd.f32 %v3587_v59, %v2283_v3  ;;  %v2285_v23 = vpop.f32.mrb[161].mxu0 }
 0x362   : > { %v2286_v25 = vpop.f32.mrb[162].mxu0 }
 0x363   : > { %2863 = vtanh.f32 %v2284_v44  ;;  %v2287_v62 = vadd.f32 %v3587_v59, %v2286_v25  ;;  %v2288_v4 = vpop.f32.mrb[163].mxu0 }
 0x365   : > { %v2860_v50 = vpop.eup %2859  ;;  %2865 = vtanh.f32 %v2287_v62 }
 0x366   : > { %2457 = vst.msk [vmem:[%s3600_s15 + $0x170] sm:$0xff] %vm2410_vm1, %v2860_v50 }
 0x367   : > { %v2862_v52 = vpop.eup %2861 }
 0x368   : > { %2458 = vst.msk [vmem:[%s3600_s15 + $0x178] sm:$0xff] %vm2410_vm1, %v2862_v52  ;;  %v2291_v36 = vpop.f32.mrb[164].mxu0 }
 0x369   : > { %v2292_v31 = vadd.f32 %v3587_v59, %v2291_v36  ;;  %v2293_v32 = vpop.f32.mrb[165].mxu0 }
 0x36a   : > { %v2294_v34 = vpop.f32.mrb[166].mxu0 }
 0x36b   : > { %2867 = vtanh.f32 %v2292_v31  ;;  %v2295_v38 = vadd.f32 %v3587_v59, %v2294_v34  ;;  %v2296_v40 = vpop.f32.mrb[167].mxu0 }
 0x36d   : > { %v2864_v43 = vpop.eup %2863  ;;  %2869 = vtanh.f32 %v2295_v38 }
 0x36e   : > { %2459 = vst.msk [vmem:[%s3600_s15 + $0x180] sm:$0xff] %vm2410_vm1, %v2864_v43 }
 0x36f   : > { %v2866_v45 = vpop.eup %2865 }
 0x370   : > { %2460 = vst.msk [vmem:[%s3600_s15 + $0x188] sm:$0xff] %vm2410_vm1, %v2866_v45  ;;  %v2299_v46 = vpop.f32.mrb[168].mxu0 }
 0x371   : > { %v2300_v48 = vadd.f32 %v3587_v59, %v2299_v46  ;;  %v2301_v33 = vpop.f32.mrb[169].mxu0 }
 0x372   : > { %v2302_v51 = vpop.f32.mrb[170].mxu0 }
 0x373   : > { %2871 = vtanh.f32 %v2300_v48  ;;  %v2303_v53 = vadd.f32 %v3587_v59, %v2302_v51  ;;  %v2304_v28 = vpop.f32.mrb[171].mxu0 }
 0x375   : > { %v2868_v54 = vpop.eup %2867  ;;  %2873 = vtanh.f32 %v2303_v53 }
 0x376   : > { %2461 = vst.msk [vmem:[%s3600_s15 + $0x190] sm:$0xff] %vm2410_vm1, %v2868_v54 }
 0x377   : > { %v2870_v55 = vpop.eup %2869 }
 0x378   : > { %2462 = vst.msk [vmem:[%s3600_s15 + $0x198] sm:$0xff] %vm2410_vm1, %v2870_v55  ;;  %v2307_v56 = vpop.f32.mrb[172].mxu0 }
 0x379   : > { %v2308_v57 = vadd.f32 %v3587_v59, %v2307_v56  ;;  %v2309_v58 = vpop.f32.mrb[173].mxu0 }
 0x37a   : > { %v2310_v6 = vpop.f32.mrb[174].mxu0 }
 0x37b   : > { %2875 = vtanh.f32 %v2308_v57  ;;  %v2311_v9 = vadd.f32 %v3587_v59, %v2310_v6  ;;  %v2312_v11 = vpop.f32.mrb[175].mxu0 }
 0x37d   : > { %v2872_v13 = vpop.eup %2871  ;;  %2877 = vtanh.f32 %v2311_v9 }
 0x37e   : > { %2463 = vst.msk [vmem:[%s3600_s15 + $0x1a0] sm:$0xff] %vm2410_vm1, %v2872_v13 }
 0x37f   : > { %v2874_v15 = vpop.eup %2873 }
 0x380   : > { %2464 = vst.msk [vmem:[%s3600_s15 + $0x1a8] sm:$0xff] %vm2410_vm1, %v2874_v15  ;;  %v2315_v17 = vpop.f32.mrb[176].mxu0 }
 0x381   : > { %v2316_v2 = vadd.f32 %v3587_v59, %v2315_v17  ;;  %v2317_v0 = vpop.f32.mrb[177].mxu0 }
 0x382   : > { %v2318_v18 = vpop.f32.mrb[178].mxu0 }
 0x383   : > { %2879 = vtanh.f32 %v2316_v2  ;;  %v2319_v19 = vadd.f32 %v3587_v59, %v2318_v18  ;;  %v2320_v63 = vpop.f32.mrb[179].mxu0 }
 0x385   : > { %v2876_v20 = vpop.eup %2875  ;;  %2881 = vtanh.f32 %v2319_v19 }
 0x386   : > { %2465 = vst.msk [vmem:[%s3600_s15 + $0x1b0] sm:$0xff] %vm2410_vm1, %v2876_v20 }
 0x387   : > { %v2878_v21 = vpop.eup %2877 }
 0x388   : > { %2466 = vst.msk [vmem:[%s3600_s15 + $0x1b8] sm:$0xff] %vm2410_vm1, %v2878_v21  ;;  %v2323_v22 = vpop.f32.mrb[180].mxu0 }
 0x389   : > { %v2324_v27 = vadd.f32 %v3587_v59, %v2323_v22  ;;  %v2325_v29 = vpop.f32.mrb[181].mxu0 }
 0x38a   : > { %v2326_v12 = vpop.f32.mrb[182].mxu0 }
 0x38b   : > { %2883 = vtanh.f32 %v2324_v27  ;;  %v2327_v35 = vadd.f32 %v3587_v59, %v2326_v12  ;;  %v2328_v37 = vpop.f32.mrb[183].mxu0 }
 0x38d   : > { %v2880_v1 = vpop.eup %2879  ;;  %2885 = vtanh.f32 %v2327_v35 }
 0x38e   : > { %2467 = vst.msk [vmem:[%s3600_s15 + $0x1c0] sm:$0xff] %vm2410_vm1, %v2880_v1 }
 0x38f   : > { %v2882_v5 = vpop.eup %2881 }
 0x390   : > { %2468 = vst.msk [vmem:[%s3600_s15 + $0x1c8] sm:$0xff] %vm2410_vm1, %v2882_v5  ;;  %v2331_v60 = vpop.f32.mrb[184].mxu0 }
 0x391   : > { %v2332_v39 = vadd.f32 %v3587_v59, %v2331_v60  ;;  %v2333_v41 = vpop.f32.mrb[185].mxu0 }
 0x392   : > { %v2334_v30 = vpop.f32.mrb[186].mxu0 }
 0x393   : > { %2887 = vtanh.f32 %v2332_v39  ;;  %v2335_v14 = vadd.f32 %v3587_v59, %v2334_v30  ;;  %v2336_v16 = vpop.f32.mrb[187].mxu0 }
 0x395   : > { %v2884_v8 = vpop.eup %2883  ;;  %2889 = vtanh.f32 %v2335_v14 }
 0x396   : > { %2469 = vst.msk [vmem:[%s3600_s15 + $0x1d0] sm:$0xff] %vm2410_vm1, %v2884_v8 }
 0x397   : > { %v2886_v47 = vpop.eup %2885 }
 0x398   : > { %2470 = vst.msk [vmem:[%s3600_s15 + $0x1d8] sm:$0xff] %vm2410_vm1, %v2886_v47  ;;  %v2339_v49 = vpop.f32.mrb[188].mxu0 }
 0x399   : > { %v2340_v7 = vadd.f32 %v3587_v59, %v2339_v49  ;;  %v2341_v10 = vpop.f32.mrb[189].mxu0 }
 0x39a   : > { %v2342_v24 = vpop.f32.mrb[190].mxu0 }
 0x39b   : > { %2891 = vtanh.f32 %v2340_v7  ;;  %v2343_v26 = vadd.f32 %v3587_v59, %v2342_v24  ;;  %v2344_v61 = vpop.f32.mrb[191].mxu0 }
 0x39d   : > { %v2888_v42 = vpop.eup %2887  ;;  %2893 = vtanh.f32 %v2343_v26 }
 0x39e   : > { %2471 = vst.msk [vmem:[%s3600_s15 + $0x1e0] sm:$0xff] %vm2410_vm1, %v2888_v42 }
 0x39f   : > { %v2890_v3 = vpop.eup %2889 }
 0x3a0   : > { %2472 = vst.msk [vmem:[%s3600_s15 + $0x1e8] sm:$0xff] %vm2410_vm1, %v2890_v3 }
 0x3a5   : > { %v2892_v44 = vpop.eup %2891 }
 0x3a6   : > { %2473 = vst.msk [vmem:[%s3600_s15 + $0x1f0] sm:$0xff] %vm2410_vm1, %v2892_v44 }
 0x3a7   : > { %v2894_v23 = vpop.eup %2893 }
 0x3a8   : > { %2474 = vst.msk [vmem:[%s3600_s15 + $0x1f8] sm:$0xff] %vm2410_vm1, %v2894_v23 }
 0x3a9 PF: > { %s17_s24 = sadd.s32 1, %s2901_s24  }
 0x3aa   : > { %p14_p4 = scmp.ge.s32.totalorder %s17_s24, 4  }
 0x3ac   :  { %16 = sbr.rel (!%p14_p4) target bundleno = 1 (0x1), region = 78 }

</bundles_post_ra>
